<compile_context>
chip_gen: v5e
topology: v5e:2x2
jax: 0.10.0
libtpu: 0.0.40
codegen_flags: <defaults>
</compile_context>

<pallas_src>
import functools

import jax
import jax.numpy as jnp
from jax import lax
from jax.experimental import pallas as pl
from jax.experimental.pallas import tpu as pltpu


def _softmax_exp_dtype():
    """bf16 exp on chips with a bf16 EUP (v6e/v7x); f32 elsewhere (v5e, v4, CPU)."""
    try:
        kind = jax.devices()[0].device_kind.lower()
    except Exception:
        return jnp.float32
    if any(tag in kind for tag in ("v6", "v7", "6e", "7x", "trillium")):
        return jnp.bfloat16
    return jnp.float32


def _head_kernel(x_ref, wqkv_ref, o_ref, *, batch, seq_len, head_size,
                 window_size, exp_dtype):
    B, T, H = batch, seq_len, head_size

    x2d = x_ref[...]                      # (B*T, C) bf16
    w = wqkv_ref[...]                     # (C, 3H) bf16, layout [q*scale | k | v]

    # One fused projection on the MXU (M = B*T fills the MXU), f32 accumulation.
    qkv = jnp.dot(x2d, w, preferred_element_type=jnp.float32)   # (B*T, 3H) f32
    qkv = qkv.reshape(B, T, 3 * H)                              # leading-dim split (free)

    q = qkv[..., :H].astype(jnp.bfloat16)        # already scaled by H**-0.5 (host)
    k = qkv[..., H:2 * H].astype(jnp.bfloat16)
    v = qkv[..., 2 * H:].astype(jnp.bfloat16)

    # Scores: batched q @ k^T, bf16 operands, f32 accumulation.
    wei = jnp.einsum('bqd,bkd->bqk', q, k,
                     preferred_element_type=jnp.float32)        # (B, T, T) f32

    # Sliding-window mask.  PyTorch:
    #   masked_fill(triu(ones(T,T), diagonal=1+window_size) == 1, -inf)
    # i.e. drop keys more than `window_size` positions ahead of the query.
    row = lax.broadcasted_iota(jnp.int32, (T, T), 0)
    col = lax.broadcasted_iota(jnp.int32, (T, T), 1)
    win = (col - row) >= (1 + window_size)
    wei = jnp.where(win[None, :, :], jnp.float32(-1e30), wei)

    # Numerically-stable softmax with deferred normalization.
    # Row max and row sum stay f32; exp runs in bf16 on v6e/v7x (bf16 EUP).
    m = jnp.max(wei, axis=-1, keepdims=True)                    # (B, T, 1) f32
    e = jnp.exp((wei - m).astype(exp_dtype))                    # (B, T, T)
    s = jnp.sum(e.astype(jnp.float32), axis=-1, keepdims=True)  # (B, T, 1) f32

    # TODO(synk): nn.Dropout(p=0.2) on the attention weights is stochastic
    # (train-mode); treated here as eval-mode identity.

    o = jnp.einsum('bqk,bkd->bqd', e.astype(jnp.bfloat16), v,
                   preferred_element_type=jnp.float32)          # (B, T, H) f32
    o = o * pl.reciprocal(s, approx=True)

    # Lane-dense store when o_ref is (B*T*H/128, 128); no-op reshape otherwise.
    o_ref[...] = o.reshape(o_ref.shape)


# Cache whether the lane-dense (in-kernel relayout) output path compiled.
_LANE_DENSE_OK = None


def head_forward(x, w_key, w_query, w_value, window_size):
    """x: (B, T, C) f32; w_*: (C, H) f32 stored so that x @ W matches PyTorch's
    nn.Linear (x @ W_pt.T, bias=False). Returns (B, T, H) f32."""
    global _LANE_DENSE_OK
    B, T, C = x.shape
    H = w_key.shape[1]

    # Fuse the three projections into one (C, 3H) weight; fold head_size**-0.5
    # into the query weight; cast MXU operands to bf16 once on the host.
    scale = jnp.float32(H) ** jnp.float32(-0.5)
    w_qkv = jnp.concatenate(
        [w_query.astype(jnp.float32) * scale,
         w_key.astype(jnp.float32),
         w_value.astype(jnp.float32)], axis=1).astype(jnp.bfloat16)   # (C, 3H)
    x2d = x.reshape(B * T, C).astype(jnp.bfloat16)                    # (B*T, C)

    exp_dtype = _softmax_exp_dtype()
    kernel = functools.partial(
        _head_kernel, batch=B, seq_len=T, head_size=H,
        window_size=int(window_size), exp_dtype=exp_dtype)

    # Advisory cost estimate for XLA scheduling around the call.
    proj_flops = 2 * B * T * C * (3 * H)
    attn_flops = 2 * (2 * B * T * T * H)            # scores + PV
    cost = pl.CostEstimate(
        flops=proj_flops + attn_flops,
        transcendentals=B * T * T + B * T,          # exp + approx reciprocal
        bytes_accessed=x2d.size * 2 + w_qkv.size * 2 + B * T * H * 4)

    # Explicit scoped-VMEM limit (inputs + qkv + two (T,T) buffers + output,
    # with 2x margin), clamped to stay within every generation's physical VMEM.
    approx_vmem = 2 * (x2d.size * 2 + w_qkv.size * 2 + B * T * 3 * H * 4
                       + 2 * B * T * T * 4 + B * T * H * 4)
    params = pltpu.CompilerParams(
        vmem_limit_bytes=int(min(max(approx_vmem, 4 << 20), 48 << 20)))

    def run(out_shape):
        return pl.pallas_call(
            kernel,
            out_shape=out_shape,
            in_specs=[pl.BlockSpec(memory_space=pltpu.MemorySpace.VMEM),
                      pl.BlockSpec(memory_space=pltpu.MemorySpace.VMEM)],
            out_specs=pl.BlockSpec(memory_space=pltpu.MemorySpace.VMEM),
            compiler_params=params,
            cost_estimate=cost,
        )(x2d, w_qkv)

    lane_dense = ((T * H) % 128 == 0) and (_LANE_DENSE_OK is not False)
    if lane_dense:
        try:
            out2d = run(jax.ShapeDtypeStruct((B * T * H // 128, 128), jnp.float32))
            _LANE_DENSE_OK = True
            # Free reshape: identical row-major element order.
            return out2d.reshape(B, T, H)
        except Exception:
            # Mosaic rejected the in-kernel relayout on this jax version;
            # fall back to the plain (narrow-lane) output layout.
            _LANE_DENSE_OK = False
    return run(jax.ShapeDtypeStruct((B, T, H), jnp.float32))


def head_reference(x, w_key, w_query, w_value, window_size):
    """Pure-JAX f32 reference matching the PyTorch forward (eval-mode dropout)."""
    k = x @ w_key
    q = x @ w_query
    v = x @ w_value
    wei = (q @ jnp.swapaxes(k, -2, -1)) * (k.shape[-1] ** -0.5)
    T = x.shape[1]
    row = jnp.arange(T)[:, None]
    col = jnp.arange(T)[None, :]
    mask = (col - row) >= (1 + window_size)
    wei = jnp.where(mask[None, :, :], -jnp.inf, wei)
    wei = jax.nn.softmax(wei, axis=-1)
    return wei @ v


if __name__ == "__main__":
    # Small shapes consistent with the module's forward:
    # B=2 batches, T=128 tokens (== block_size), C=128 embedding (scaled-down
    # n_embd), head_size=32, window_size=16 (so the window mask is non-trivial).
    B, T, C, H = 2, 128, 128, 32
    window_size = 16

    key = jax.random.PRNGKey(0)
    kx, kk, kq, kv = jax.random.split(key, 4)
    x = jax.random.normal(kx, (B, T, C), dtype=jnp.float32)
    # Deterministic parameter init (nn.Linear-like scale), stored as (C, H).
    w_key = jax.random.normal(kk, (C, H), dtype=jnp.float32) * 0.02
    w_query = jax.random.normal(kq, (C, H), dtype=jnp.float32) * 0.02
    w_value = jax.random.normal(kv, (C, H), dtype=jnp.float32) * 0.02

    out = head_forward(x, w_key, w_query, w_value, window_size)
    out = jax.block_until_ready(out)

    ref = head_reference(x, w_key, w_query, w_value, window_size)
    assert out.shape == (B, T, H), out.shape
    # Tolerance relaxed vs. the f32 reference: bf16 MXU operands (f32 accum),
    # bf16 exp on v6e/v7x, and approx reciprocal in the softmax denominator.
    assert jnp.allclose(out, ref, atol=2e-2, rtol=2e-2), "mismatch vs reference"

    print("KERNEL_OK")
</pallas_src>

<mosaic_0001>
module attributes {stable_mosaic.version = 11 : i64} {
  func.func @_head_kernel(%arg0: memref<256x128xbf16, #tpu.memory_space<vmem>>, %arg1: memref<128x96xbf16, #tpu.memory_space<vmem>>, %arg2: memref<64x128xf32, #tpu.memory_space<vmem>>) attributes {dimension_semantics = [], scalar_prefetch = 0 : i64, scratch_operands = 0 : i64, tpu.core_type = #tpu.core_type<tc>} {
    %c0 = arith.constant 0 : index
    %c0_0 = arith.constant 0 : index
    %0 = vector.load %arg0[%c0, %c0_0] : memref<256x128xbf16, #tpu.memory_space<vmem>>, vector<256x128xbf16>
    %c0_1 = arith.constant 0 : index
    %c0_2 = arith.constant 0 : index
    %1 = vector.load %arg1[%c0_1, %c0_2] : memref<128x96xbf16, #tpu.memory_space<vmem>>, vector<128x96xbf16>
    %cst = arith.constant dense<0.000000e+00> : vector<256x96xf32>
    %2 = tpu.matmul %0, %1, %cst {dimension_numbers = #tpu.dot_dimension_numbers<[1], [0], [0], [1], [0, 0, 1, 1], [], []>} : vector<256x128xbf16>, vector<128x96xbf16>, vector<256x96xf32> -> vector<256x96xf32>
    %3 = vector.shape_cast %2 : vector<256x96xf32> to vector<2x128x96xf32>
    %4 = vector.extract_strided_slice %3 {offsets = [0, 0, 0], sizes = [2, 128, 32], strides = [1, 1, 1]} : vector<2x128x96xf32> to vector<2x128x32xf32>
    %5 = arith.truncf %4 : vector<2x128x32xf32> to vector<2x128x32xbf16>
    %6 = vector.extract_strided_slice %3 {offsets = [0, 0, 32], sizes = [2, 128, 32], strides = [1, 1, 1]} : vector<2x128x96xf32> to vector<2x128x32xf32>
    %7 = arith.truncf %6 : vector<2x128x32xf32> to vector<2x128x32xbf16>
    %8 = vector.extract_strided_slice %3 {offsets = [0, 0, 64], sizes = [2, 128, 32], strides = [1, 1, 1]} : vector<2x128x96xf32> to vector<2x128x32xf32>
    %9 = arith.truncf %8 : vector<2x128x32xf32> to vector<2x128x32xbf16>
    "tpu.trace_start"() <{level = 10 : i32, message = "bqd,bkd->bqk"}> : () -> ()
    %cst_3 = arith.constant dense<0.000000e+00> : vector<2x128x128xf32>
    %10 = tpu.matmul %5, %7, %cst_3 {dimension_numbers = #tpu.dot_dimension_numbers<[2], [2], [1], [1], [0, 0, 0, 1, 1, 1], [0], [0]>} : vector<2x128x32xbf16>, vector<2x128x32xbf16>, vector<2x128x128xf32> -> vector<2x128x128xf32>
    "tpu.trace_stop"() : () -> ()
    %11 = tpu.iota {dimensions = array<i32: 0>} : vector<128x128xi32>
    %12 = tpu.iota {dimensions = array<i32: 1>} : vector<128x128xi32>
    %13 = arith.subi %12, %11 : vector<128x128xi32>
    %c17_i32 = arith.constant 17 : i32
    %14 = vector.broadcast %c17_i32 : i32 to vector<128x128xi32>
    %15 = arith.cmpi sge, %13, %14 : vector<128x128xi32>
    %16 = vector.shape_cast %15 : vector<128x128xi1> to vector<1x128x128xi1>
    %cst_4 = arith.constant -1.000000e+30 : f32
    %17 = vector.shape_cast %16 : vector<1x128x128xi1> to vector<1x128x128xi1>
    %18 = vector.broadcast %17 : vector<1x128x128xi1> to vector<2x128x128xi1>
    %19 = vector.broadcast %cst_4 : f32 to vector<2x128x128xf32>
    %20 = arith.select %18, %19, %10 : vector<2x128x128xi1>, vector<2x128x128xf32>
    %cst_5 = arith.constant dense<0xFF800000> : vector<2x128xf32>
    %21 = vector.multi_reduction <maximumf>, %20, %cst_5 [2] : vector<2x128x128xf32> to vector<2x128xf32>
    %22 = vector.shape_cast %21 : vector<2x128xf32> to vector<2x128x1xf32>
    %23 = vector.broadcast %22 : vector<2x128x1xf32> to vector<2x128x128xf32>
    %24 = arith.subf %20, %23 : vector<2x128x128xf32>
    %25 = math.exp %24 : vector<2x128x128xf32>
    %cst_6 = arith.constant dense<0.000000e+00> : vector<2x128xf32>
    %26 = vector.multi_reduction <add>, %25, %cst_6 [2] : vector<2x128x128xf32> to vector<2x128xf32>
    %27 = vector.shape_cast %26 : vector<2x128xf32> to vector<2x128x1xf32>
    %28 = arith.truncf %25 : vector<2x128x128xf32> to vector<2x128x128xbf16>
    "tpu.trace_start"() <{level = 10 : i32, message = "bqk,bkd->bqd"}> : () -> ()
    %cst_7 = arith.constant dense<0.000000e+00> : vector<2x128x32xf32>
    %29 = tpu.matmul %28, %9, %cst_7 {dimension_numbers = #tpu.dot_dimension_numbers<[2], [1], [1], [2], [0, 0, 0, 1, 1, 2], [0], [0]>} : vector<2x128x128xbf16>, vector<2x128x32xbf16>, vector<2x128x32xf32> -> vector<2x128x32xf32>
    "tpu.trace_stop"() : () -> ()
    %30 = tpu.reciprocal %27 {approx = true} : vector<2x128x1xf32> -> vector<2x128x1xf32>
    %31 = vector.broadcast %30 : vector<2x128x1xf32> to vector<2x128x32xf32>
    %32 = arith.mulf %29, %31 : vector<2x128x32xf32>
    %33 = vector.shape_cast %32 : vector<2x128x32xf32> to vector<64x128xf32>
    %c0_8 = arith.constant 0 : index
    %c0_9 = arith.constant 0 : index
    %34 = vector.load %arg2[%c0_8, %c0_9] : memref<64x128xf32, #tpu.memory_space<vmem>>, vector<64x128xf32>
    tpu.vector_store %arg2[%c0_8, %c0_9], %33 {strides = array<i32>} : memref<64x128xf32, #tpu.memory_space<vmem>>, vector<64x128xf32>,
    return
  }
}

module attributes {stable_mosaic.version = 11 : i64} {
  func.func @_head_kernel(%arg0: memref<256x128xbf16, #tpu.memory_space<vmem>>, %arg1: memref<128x96xbf16, #tpu.memory_space<vmem>>, %arg2: memref<2x128x32xf32, #tpu.memory_space<vmem>>) attributes {dimension_semantics = [], scalar_prefetch = 0 : i64, scratch_operands = 0 : i64, tpu.core_type = #tpu.core_type<tc>} {
    %c0 = arith.constant 0 : index
    %c0_0 = arith.constant 0 : index
    %0 = vector.load %arg0[%c0, %c0_0] : memref<256x128xbf16, #tpu.memory_space<vmem>>, vector<256x128xbf16>
    %c0_1 = arith.constant 0 : index
    %c0_2 = arith.constant 0 : index
    %1 = vector.load %arg1[%c0_1, %c0_2] : memref<128x96xbf16, #tpu.memory_space<vmem>>, vector<128x96xbf16>
    %cst = arith.constant dense<0.000000e+00> : vector<256x96xf32>
    %2 = tpu.matmul %0, %1, %cst {dimension_numbers = #tpu.dot_dimension_numbers<[1], [0], [0], [1], [0, 0, 1, 1], [], []>} : vector<256x128xbf16>, vector<128x96xbf16>, vector<256x96xf32> -> vector<256x96xf32>
    %3 = vector.shape_cast %2 : vector<256x96xf32> to vector<2x128x96xf32>
    %4 = vector.extract_strided_slice %3 {offsets = [0, 0, 0], sizes = [2, 128, 32], strides = [1, 1, 1]} : vector<2x128x96xf32> to vector<2x128x32xf32>
    %5 = arith.truncf %4 : vector<2x128x32xf32> to vector<2x128x32xbf16>
    %6 = vector.extract_strided_slice %3 {offsets = [0, 0, 32], sizes = [2, 128, 32], strides = [1, 1, 1]} : vector<2x128x96xf32> to vector<2x128x32xf32>
    %7 = arith.truncf %6 : vector<2x128x32xf32> to vector<2x128x32xbf16>
    %8 = vector.extract_strided_slice %3 {offsets = [0, 0, 64], sizes = [2, 128, 32], strides = [1, 1, 1]} : vector<2x128x96xf32> to vector<2x128x32xf32>
    %9 = arith.truncf %8 : vector<2x128x32xf32> to vector<2x128x32xbf16>
    "tpu.trace_start"() <{level = 10 : i32, message = "bqd,bkd->bqk"}> : () -> ()
    %cst_3 = arith.constant dense<0.000000e+00> : vector<2x128x128xf32>
    %10 = tpu.matmul %5, %7, %cst_3 {dimension_numbers = #tpu.dot_dimension_numbers<[2], [2], [1], [1], [0, 0, 0, 1, 1, 1], [0], [0]>} : vector<2x128x32xbf16>, vector<2x128x32xbf16>, vector<2x128x128xf32> -> vector<2x128x128xf32>
    "tpu.trace_stop"() : () -> ()
    %11 = tpu.iota {dimensions = array<i32: 0>} : vector<128x128xi32>
    %12 = tpu.iota {dimensions = array<i32: 1>} : vector<128x128xi32>
    %13 = arith.subi %12, %11 : vector<128x128xi32>
    %c17_i32 = arith.constant 17 : i32
    %14 = vector.broadcast %c17_i32 : i32 to vector<128x128xi32>
    %15 = arith.cmpi sge, %13, %14 : vector<128x128xi32>
    %16 = vector.shape_cast %15 : vector<128x128xi1> to vector<1x128x128xi1>
    %cst_4 = arith.constant -1.000000e+30 : f32
    %17 = vector.shape_cast %16 : vector<1x128x128xi1> to vector<1x128x128xi1>
    %18 = vector.broadcast %17 : vector<1x128x128xi1> to vector<2x128x128xi1>
    %19 = vector.broadcast %cst_4 : f32 to vector<2x128x128xf32>
    %20 = arith.select %18, %19, %10 : vector<2x128x128xi1>, vector<2x128x128xf32>
    %cst_5 = arith.constant dense<0xFF800000> : vector<2x128xf32>
    %21 = vector.multi_reduction <maximumf>, %20, %cst_5 [2] : vector<2x128x128xf32> to vector<2x128xf32>
    %22 = vector.shape_cast %21 : vector<2x128xf32> to vector<2x128x1xf32>
    %23 = vector.broadcast %22 : vector<2x128x1xf32> to vector<2x128x128xf32>
    %24 = arith.subf %20, %23 : vector<2x128x128xf32>
    %25 = math.exp %24 : vector<2x128x128xf32>
    %cst_6 = arith.constant dense<0.000000e+00> : vector<2x128xf32>
    %26 = vector.multi_reduction <add>, %25, %cst_6 [2] : vector<2x128x128xf32> to vector<2x128xf32>
    %27 = vector.shape_cast %26 : vector<2x128xf32> to vector<2x128x1xf32>
    %28 = arith.truncf %25 : vector<2x128x128xf32> to vector<2x128x128xbf16>
    "tpu.trace_start"() <{level = 10 : i32, message = "bqk,bkd->bqd"}> : () -> ()
    %cst_7 = arith.constant dense<0.000000e+00> : vector<2x128x32xf32>
    %29 = tpu.matmul %28, %9, %cst_7 {dimension_numbers = #tpu.dot_dimension_numbers<[2], [1], [1], [2], [0, 0, 0, 1, 1, 2], [0], [0]>} : vector<2x128x128xbf16>, vector<2x128x32xbf16>, vector<2x128x32xf32> -> vector<2x128x32xf32>
    "tpu.trace_stop"() : () -> ()
    %30 = tpu.reciprocal %27 {approx = true} : vector<2x128x1xf32> -> vector<2x128x1xf32>
    %31 = vector.broadcast %30 : vector<2x128x1xf32> to vector<2x128x32xf32>
    %32 = arith.mulf %29, %31 : vector<2x128x32xf32>
    %c0_8 = arith.constant 0 : index
    %c0_9 = arith.constant 0 : index
    %c0_10 = arith.constant 0 : index
    %33 = vector.load %arg2[%c0_8, %c0_9, %c0_10] : memref<2x128x32xf32, #tpu.memory_space<vmem>>, vector<2x128x32xf32>
    tpu.vector_store %arg2[%c0_8, %c0_9, %c0_10], %32 {strides = array<i32>} : memref<2x128x32xf32, #tpu.memory_space<vmem>>, vector<2x128x32xf32>,
    return
  }
}

</mosaic_0001>

<bundles_post_ra>
// kernel: tpu_custom_call.1
= control target key start
LH: loop header
LB: loop body
LE: loop exit
PB: predicated region body
PF: predicated region fallthrough
CT: control target
= control target key end

     0   :  { %7 = vsyncpa [#allocation3], 0  ;;  %s1655_s12 = smov [#allocation2]   ;;  %s1656_s14 = smov 64   ;;  %s2380_s0 = inlined_call_operand.hbm [shape: bf16[256,128], index: 0, kind: input, shape index: {}]   ;;  %s2381_s1 = inlined_call_operand.vmem [shape: bf16[128,96], index: 1, kind: input, shape index: {}]   ;;  %s2382_s2 = inlined_call_operand.vmem [shape: f32[2,128,32], index: 2, kind: output, shape index: {}]  }
   0x1   :  { %s12_s11 = sshll.u32 %s2380_s0, 4  ;;  %s14_s13 = sshll.u32 %s1655_s12, 4  ;;  %s13_s11 = int_to_ptr.hbm [resolvable:$true] %s12_s11  ;;  %s15_s13 = int_to_ptr.vmem [resolvable:$true] %s14_s13 }
   0x2   :  { %s1657_s15 = smov 4  }
   0x3   :  { %20 = dma.hbm_to_vmem [thread:$0]  %s13_s11, 2048, %s15_s13, [#allocation3], %s1656_s14, %s1656_s14, %s1657_s15  }
   0x4   :  { %1653 = dma.done.wait [#allocation3], 2048  }
   0x5   :  { %1654 = vsyncadd [#allocation3], 4294965248  ;;  %v1496_v0 = vld [vmem:[%s2381_s1 + $0x38] sm:$0xff]  ;;  %v1495_v1 = vld [vmem:[%s2381_s1 + $0x30] sm:$0xff]  ;;  %vm396_vm0 = vcmask 261120  }
   0x6   :  { %219 = vmatpush.bf16.msra.mxu0 %v1496_v0  ;;  %v1494_v2 = vld [vmem:[%s2381_s1 + $0x28] sm:$0xff]  ;;  %v1493_v3 = vld [vmem:[%s2381_s1 + $0x20] sm:$0xff]  ;;  %v1492_v4 = vld [vmem:[%s2381_s1 + $0x18] sm:$0xff] }
   0x7   :  { %v1491_v5 = vld [vmem:[%s2381_s1 + $0x10] sm:$0xff]  ;;  %v1490_v6 = vld [vmem:[%s2381_s1 + $0x8] sm:$0xff]  ;;  %v1489_v7 = vld [vmem:[%s2381_s1] sm:$0xff]  ;;  %s1658_s1 = smov 96  }
   0x8   :  { %v1473_v8 = vld [vmem:[#allocation2] sm:$0xff]  ;;  %v1474_v9 = vld [vmem:[#allocation2 + $0x8] sm:$0xff]  ;;  %v1475_v10 = vld [vmem:[#allocation2 + $0x10] sm:$0xff] }
   0x9   :  { %v1476_v11 = vld [vmem:[#allocation2 + $0x18] sm:$0xff]  ;;  %v1477_v12 = vld [vmem:[#allocation2 + $0x20] sm:$0xff]  ;;  %v1478_v13 = vld [vmem:[#allocation2 + $0x28] sm:$0xff] }
   0xa   :  { %220 = vmatpush.bf16.msra.mxu0 %v1495_v1  ;;  %v1479_v14 = vld [vmem:[#allocation2 + $0x30] sm:$0xff]  ;;  %v1480_v15 = vld [vmem:[#allocation2 + $0x38] sm:$0xff]  ;;  %v1481_v16 = vld [vmem:[#allocation2 + $0x40] sm:$0xff] }
   0xb   :  { %v1482_v24 = vld [vmem:[#allocation2 + $0x48] sm:$0xff]  ;;  %v1483_v32 = vld [vmem:[#allocation2 + $0x50] sm:$0xff]  ;;  %v1484_v35 = vld [vmem:[#allocation2 + $0x58] sm:$0xff] }
   0xc   :  { %v1485_v45 = vld [vmem:[#allocation2 + $0x60] sm:$0xff]  ;;  %v1486_v51 = vld [vmem:[#allocation2 + $0x68] sm:$0xff]  ;;  %v1487_v61 = vld [vmem:[#allocation2 + $0x70] sm:$0xff] }
   0xe   :  { %221 = vmatpush.bf16.msra.mxu0 %v1494_v2 }
  0x12   :  { %222 = vmatpush.bf16.msra.mxu0 %v1493_v3  ;;  %v1488_v3 = vld [vmem:[#allocation2 + $0x78] sm:$0xff] }
  0x16   :  { %223 = vmatpush.bf16.msra.mxu0 %v1492_v4 }
  0x1a   :  { %224 = vmatpush.bf16.msra.mxu0 %v1491_v5 }
  0x1e   :  { %225 = vmatpush.bf16.msra.mxu0 %v1490_v6 }
  0x22   :  { %226 = vmatpush.bf16.msra.mxu0 %v1489_v7 }
  0x25   :  { %227 = vmatmul.bf16.vlgmr.msra.gmra.mxu0 %v1473_v8 }
  0x35   :  { %232 = vmatmul.bf16.gmra.mxu0 %v1474_v9 }
  0x45   :  { %237 = vmatmul.bf16.gmra.mxu0 %v1475_v10 }
  0x55   :  { %242 = vmatmul.bf16.gmra.mxu0 %v1476_v11 }
  0x65   :  { %247 = vmatmul.bf16.gmra.mxu0 %v1477_v12 }
  0x75   :  { %252 = vmatmul.bf16.gmra.mxu0 %v1478_v13 }
  0x85   :  { %257 = vmatmul.bf16.gmra.mxu0 %v1479_v14 }
  0x95   :  { %262 = vmatmul.bf16.gmra.mxu0 %v1480_v15 }
  0xa2   :  { %v228_v17 = vpop.f32.mrf.mxu0 }
  0xa3   :  { %v308_v18 = vpack.c.bf16 %v228_v17, %v228_v17 }
  0xa5   :  { %267 = vmatmul.bf16.gmra.mxu0 %v1481_v16  ;;  %v356_v21 = vunpack.c.l.b16 %v308_v18 }
  0xaa   :  { %v230_v19 = vpop.f32.mrf.mxu0 }
  0xab   :  { %v309_v20 = vpack.c.bf16 %v230_v19, %v230_v19 }
  0xad   :  { %v357_v22 = vunpack.c.l.b16 %v309_v20 }
  0xaf   :  { %v1703_v23 = vpack.c.b16 %v357_v22, %v356_v21 }
  0xb2   :  { %v233_v25 = vpop.f32.mrf.mxu0 }
  0xb3   :  { %v310_v26 = vpack.c.bf16 %v233_v25, %v233_v25 }
  0xb5   :  { %272 = vmatmul.bf16.gmra.mxu0 %v1482_v24  ;;  %v358_v29 = vunpack.c.l.b16 %v310_v26 }
  0xba   :  { %v235_v27 = vpop.f32.mrf.mxu0 }
  0xbb   :  { %v311_v28 = vpack.c.bf16 %v235_v27, %v235_v27 }
  0xbd   :  { %v359_v30 = vunpack.c.l.b16 %v311_v28 }
  0xbf   :  { %v1705_v31 = vpack.c.b16 %v359_v30, %v358_v29 }
  0xc2   :  { %v238_v33 = vpop.f32.mrf.mxu0 }
  0xc3   :  { %v312_v44 = vpack.c.bf16 %v238_v33, %v238_v33 }
  0xc5   :  { %277 = vmatmul.bf16.gmra.mxu0 %v1483_v32  ;;  %v360_v48 = vunpack.c.l.b16 %v312_v44 }
  0xca   :  { %v240_v34 = vpop.f32.mrf.mxu0 }
  0xcb   :  { %v313_v42 = vpack.c.bf16 %v240_v34, %v240_v34 }
  0xcd   :  { %v361_v47 = vunpack.c.l.b16 %v313_v42 }
  0xcf   :  { %v1711_v49 = vpack.c.b16 %v361_v47, %v360_v48 }
  0xd2   :  { %v243_v36 = vpop.f32.mrf.mxu0 }
  0xd3   :  { %v314_v37 = vpack.c.bf16 %v243_v36, %v243_v36 }
  0xd5   :  { %282 = vmatmul.bf16.gmra.mxu0 %v1484_v35  ;;  %v362_v40 = vunpack.c.l.b16 %v314_v37 }
  0xda   :  { %v245_v38 = vpop.f32.mrf.mxu0 }
  0xdb   :  { %v315_v39 = vpack.c.bf16 %v245_v38, %v245_v38 }
  0xdd   :  { %v363_v41 = vunpack.c.l.b16 %v315_v39 }
  0xdf   :  { %v1707_v43 = vpack.c.b16 %v363_v41, %v362_v40 }
  0xe1   :  { %386 = vrot.lane.b32.xlu2 %v1707_v43, %s1658_s1 }
  0xe2   :  { %v248_v46 = vpop.f32.mrf.mxu0 }
  0xe3   :  { %v316_v60 = vpack.c.bf16 %v248_v46, %v248_v46 }
  0xe5   :  { %287 = vmatmul.bf16.gmra.mxu0 %v1485_v45  ;;  %v364_v0 = vunpack.c.l.b16 %v316_v60 }
  0xe9   :  { %384 = vrot.lane.b32.xlu2 %v1711_v49, %s1658_s1 }
  0xea   :  { %v250_v50 = vpop.f32.mrf.mxu0 }
  0xeb   :  { %v317_v58 = vpack.c.bf16 %v250_v50, %v250_v50 }
  0xed   :  { %v365_v63 = vunpack.c.l.b16 %v317_v58 }
  0xef   :  { %v1719_v1 = vpack.c.b16 %v365_v63, %v364_v0 }
  0xf2   :  { %v253_v52 = vpop.f32.mrf.mxu0 }
  0xf3   :  { %v318_v53 = vpack.c.bf16 %v253_v52, %v253_v52 }
  0xf5   :  { %292 = vmatmul.bf16.gmra.mxu0 %v1486_v51  ;;  %v366_v56 = vunpack.c.l.b16 %v318_v53 }
  0xfa   :  { %v255_v54 = vpop.f32.mrf.mxu0 }
  0xfb   :  { %v319_v55 = vpack.c.bf16 %v255_v54, %v255_v54 }
  0xfd   :  { %v367_v57 = vunpack.c.l.b16 %v319_v55 }
  0xff   :  { %v1715_v59 = vpack.c.b16 %v367_v57, %v366_v56 }
 0x101   :  { %390 = vrot.lane.b32.xlu1 %v1715_v59, %s1658_s1 }
 0x102   :  { %v258_v62 = vpop.f32.mrf.mxu0 }
 0x103   :  { %v320_v12 = vpack.c.bf16 %v258_v62, %v258_v62 }
 0x105   :  { %297 = vmatmul.bf16.gmra.mxu0 %v1487_v61  ;;  %v368_v15 = vunpack.c.l.b16 %v320_v12 }
 0x109   :  { %388 = vrot.lane.b32.xlu1 %v1719_v1, %s1658_s1 }
 0x10a   :  { %v260_v2 = vpop.f32.mrf.mxu0 }
 0x10b   :  { %v321_v10 = vpack.c.bf16 %v260_v2, %v260_v2 }
 0x10d   :  { %v369_v14 = vunpack.c.l.b16 %v321_v10 }
 0x10f   :  { %v1729_v16 = vpack.c.b16 %v369_v14, %v368_v15 }
 0x111   :  { %380 = vrot.lane.b32.xlu1 %v1703_v23, %s1658_s1 }
 0x112   :  { %v263_v4 = vpop.f32.mrf.mxu0 }
 0x113   :  { %v322_v5 = vpack.c.bf16 %v263_v4, %v263_v4 }
 0x115   :  { %302 = vmatmul.bf16.gmra.mxu0 %v1488_v3  ;;  %v370_v8 = vunpack.c.l.b16 %v322_v5 }
 0x11a   :  { %v265_v6 = vpop.f32.mrf.mxu0 }
 0x11b   :  { %v323_v7 = vpack.c.bf16 %v265_v6, %v265_v6 }
 0x11d   :  { %v371_v9 = vunpack.c.l.b16 %v323_v7 }
 0x11f   :  { %v1725_v11 = vpack.c.b16 %v371_v9, %v370_v8 }
 0x121   :  { %394 = vrot.lane.b32.xlu0 %v1725_v11, %s1658_s1 }
 0x122   :  { %v268_v13 = vpop.f32.mrf.mxu0 }
 0x123   :  { %v324_v17 = vpack.c.bf16 %v268_v13, %v268_v13 }
 0x125   :  { %v510_v19 = vunpack.c.l.b16 %v324_v17 }
 0x129   :  { %392 = vrot.lane.b32.xlu0 %v1729_v16, %s1658_s1 }
 0x12a   :  { %v270_v18 = vpop.f32.mrf.mxu0 }
 0x12b   :  { %v325_v20 = vpack.c.bf16 %v270_v18, %v270_v18 }
 0x12d   :  { %v511_v21 = vunpack.c.l.b16 %v325_v20 }
 0x12f   :  { %v1733_v22 = vpack.c.b16 %v511_v21, %v510_v19 }
 0x131   :  { %382 = vrot.lane.b32.xlu0 %v1705_v31, %s1658_s1 }
 0x132   :  { %v273_v24 = vpop.f32.mrf.mxu0 }
 0x133   :  { %v326_v25 = vpack.c.bf16 %v273_v24, %v273_v24 }
 0x135   :  { %v512_v27 = vunpack.c.l.b16 %v326_v25 }
 0x13a   :  { %v275_v26 = vpop.f32.mrf.mxu0 }
 0x13b   :  { %v327_v28 = vpack.c.bf16 %v275_v26, %v275_v26  ;;  %v387_v26 = vpop.permute.xlu2 %386 }
 0x13d   :  { %v513_v29 = vunpack.c.l.b16 %v327_v28 }
 0x13f   :  { %v1737_v30 = vpack.c.b16 %v513_v29, %v512_v27  ;;  %v431_v27 = vsel %vm396_vm0, %v387_v26, 0 }
 0x142   :  { %v278_v32 = vpop.f32.mrf.mxu0 }
 0x143   :  { %v328_v44 = vpack.c.bf16 %v278_v32, %v278_v32  ;;  %v385_v28 = vpop.permute.xlu2 %384 }
 0x144   :  { %v428_v29 = vsel %vm396_vm0, %v385_v28, 0 }
 0x145   :  { %v514_v48 = vunpack.c.l.b16 %v328_v44 }
 0x14a   :  { %v280_v33 = vpop.f32.mrf.mxu0 }
 0x14b   :  { %v329_v45 = vpack.c.bf16 %v280_v33, %v280_v33 }
 0x14d   :  { %v515_v50 = vunpack.c.l.b16 %v329_v45 }
 0x14f   :  { %v1743_v52 = vpack.c.b16 %v515_v50, %v514_v48 }
 0x152   :  { %v283_v34 = vpop.f32.mrf.mxu0 }
 0x153   :  { %v330_v57 = vpack.c.bf16 %v283_v34, %v283_v34 }
 0x155   :  { %v516_v62 = vunpack.c.l.b16 %v330_v57 }
 0x15a   :  { %v285_v35 = vpop.f32.mrf.mxu0 }
 0x15b   :  { %v331_v58 = vpack.c.bf16 %v285_v35, %v285_v35 }
 0x15d   :  { %v517_v63 = vunpack.c.l.b16 %v331_v58 }
 0x15f   :  { %v1754_v4 = vpack.c.b16 %v517_v63, %v516_v62 }
 0x162   :  { %v288_v36 = vpop.f32.mrf.mxu0 }
 0x163   :  { %v332_v13 = vpack.c.bf16 %v288_v36, %v288_v36 }
 0x165   :  { %v518_v18 = vunpack.c.l.b16 %v332_v13 }
 0x16a   :  { %v290_v37 = vpop.f32.mrf.mxu0 }
 0x16b   :  { %v333_v14 = vpack.c.bf16 %v290_v37, %v290_v37 }
 0x16d   :  { %v519_v19 = vunpack.c.l.b16 %v333_v14 }
 0x16f   :  { %v1770_v21 = vpack.c.b16 %v519_v19, %v518_v18 }
 0x172   :  { %v293_v38 = vpop.f32.mrf.mxu0 }
 0x173   :  { %v334_v39 = vpack.c.bf16 %v293_v38, %v293_v38  ;;  %v391_v15 = vpop.permute.xlu1 %390 }
 0x174   :  { %v437_v20 = vsel %vm396_vm0, %v391_v15, 0 }
 0x175   :  { %v520_v41 = vunpack.c.l.b16 %v334_v39 }
 0x17a   :  { %v295_v40 = vpop.f32.mrf.mxu0 }
 0x17b   :  { %v335_v42 = vpack.c.bf16 %v295_v40, %v295_v40  ;;  %v389_v24 = vpop.permute.xlu1 %388 }
 0x17c   :  { %v434_v25 = vsel %vm396_vm0, %v389_v24, 0 }
 0x17d   :  { %v521_v46 = vunpack.c.l.b16 %v335_v42 }
 0x17f   :  { %v1739_v47 = vpack.c.b16 %v521_v46, %v520_v41 }
 0x181   :  { %544 = vrot.lane.b32.xlu1 %v1739_v47, %s1658_s1 }
 0x182   :  { %v298_v51 = vpop.f32.mrf.mxu0 }
 0x183   :  { %v336_v53 = vpack.c.bf16 %v298_v51, %v298_v51  ;;  %v381_v34 = vpop.permute.xlu1 %380 }
 0x184   :  { %v422_v35 = vsel %vm396_vm0, %v381_v34, 0 }
 0x185   :  { %v522_v55 = vunpack.c.l.b16 %v336_v53 }
 0x189   :  { %538 = vrot.lane.b32.xlu1 %v1743_v52, %s1658_s1 }
 0x18a   :  { %v300_v54 = vpop.f32.mrf.mxu0 }
 0x18b   :  { %v337_v56 = vpack.c.bf16 %v300_v54, %v300_v54 }
 0x18d   :  { %v523_v60 = vunpack.c.l.b16 %v337_v56 }
 0x18f   :  { %v1747_v61 = vpack.c.b16 %v523_v60, %v522_v55 }
 0x191   :  { %1080 = vrot.lane.b32.xlu1 %v1725_v11, %s1656_s14  ;;  %546 = vrot.lane.b32.xlu0 %v1747_v61, %s1658_s1 }
 0x192   :  { %v303_v0 = vpop.f32.mrf.mxu0 }
 0x193   :  { %v395_v2 = vpop.permute.xlu0 %394  ;;  %v338_v5 = vpack.c.bf16 %v303_v0, %v303_v0 }
 0x194   :  { %v443_v3 = vsel %vm396_vm0, %v395_v2, 0 }
 0x195   :  { %445 = vmatpush.bf16.xpose.msra.mxu1 %v443_v3  ;;  %v524_v7 = vunpack.c.l.b16 %v338_v5 }
 0x199   :  { %1074 = vrot.lane.b32.xlu1 %v1719_v1, %s1656_s14  ;;  %540 = vrot.lane.b32.xlu0 %v1754_v4, %s1658_s1 }
 0x19a   :  { %v305_v6 = vpop.f32.mrf.mxu0 }
 0x19b   :  { %v339_v8 = vpack.c.bf16 %v305_v6, %v305_v6  ;;  %v393_v9 = vpop.permute.xlu0 %392 }
 0x19c   :  { %v440_v10 = vsel %vm396_vm0, %v393_v9, 0 }
 0x19d   :  { %v525_v12 = vunpack.c.l.b16 %v339_v8  ;;  %446 = vmatpush.bf16.xpose.msra.mxu1 %v440_v10 }
 0x19f   :  { %v1761_v17 = vpack.c.b16 %v525_v12, %v524_v7 }
 0x1a1   :  { %1072 = vrot.lane.b32.xlu1 %v1707_v43, %s1656_s14  ;;  %534 = vrot.lane.b32.xlu0 %v1733_v22, %s1658_s1 }
 0x1a2   :  { %548 = vrot.lane.b32.xlu2 %v1761_v17, %s1658_s1 }
 0x1a3   :  { %v383_v32 = vpop.permute.xlu0 %382 }
 0x1a4   :  { %v425_v33 = vsel %vm396_vm0, %v383_v32, 0 }
 0x1a5   :  { %447 = vmatpush.bf16.xpose.msra.mxu1 %v437_v20 }
 0x1a9   :  { %1070 = vrot.lane.b32.xlu1 %v1711_v49, %s1656_s14  ;;  %1076 = vrot.lane.b32.xlu0 %v1715_v59, %s1656_s14 }
 0x1aa   :  { %542 = vrot.lane.b32.xlu2 %v1770_v21, %s1658_s1 }
 0x1ad   :  { %448 = vmatpush.bf16.xpose.msra.mxu1 %v434_v25 }
 0x1b1   :  { %1068 = vrot.lane.b32.xlu1 %v1705_v31, %s1656_s14 }
 0x1b2   :  { %536 = vrot.lane.b32.xlu2 %v1737_v30, %s1658_s1 }
 0x1b5   :  { %449 = vmatpush.bf16.xpose.msra.mxu1 %v431_v27 }
 0x1b9   :  { %1066 = vrot.lane.b32.xlu1 %v1703_v23, %s1656_s14 }
 0x1ba   :  { %1078 = vrot.lane.b32.xlu2 %v1729_v16, %s1656_s14 }
 0x1bd   :  { %450 = vmatpush.bf16.xpose.msra.mxu1 %v428_v29 }
 0x1c5   :  { %451 = vmatpush.bf16.xpose.msra.mxu1 %v425_v33 }
 0x1cd   :  { %452 = vmatpush.bf16.xpose.msra.mxu1 %v422_v35 }
 0x1d4   :  { %1457 = vmatmul.msk.bf16.vlgmr.msra.gmra.mxu1 %vm396_vm0, %v1703_v23 }
 0x1e4   :  { %1458 = vmatmul.msk.bf16.gmra.mxu1 %vm396_vm0, %v1705_v31 }
 0x1f3   :  { %v545_v36 = vpop.permute.xlu1 %544 }
 0x1f4   :  { %1459 = vmatmul.msk.bf16.gmra.mxu1 %vm396_vm0, %v1711_v49  ;;  %v590_v45 = vsel %vm396_vm0, %v545_v36, 0 }
 0x1fb   :  { %v539_v37 = vpop.permute.xlu1 %538 }
 0x1fc   :  { %v549_v38 = vpop.permute.xlu2 %548  ;;  %v581_v55 = vsel %vm396_vm0, %v539_v37, 0 }
 0x1fd   :  { %v596_v39 = vsel %vm396_vm0, %v549_v38, 0 }
 0x1fe   :  { %598 = vmatpush.bf16.xpose.msra.mxu2 %v596_v39 }
 0x203   :  { %v1081_v40 = vpop.permute.xlu1 %1080  ;;  %v547_v41 = vpop.permute.xlu0 %546 }
 0x204   :  { %v543_v42 = vpop.permute.xlu2 %542  ;;  %1460 = vmatmul.msk.bf16.gmra.mxu1 %vm396_vm0, %v1707_v43  ;;  %1090 = vmatpush.bf16.msra.mxu3 %v1081_v40  ;;  %v593_v23 = vsel %vm396_vm0, %v547_v41, 0 }
 0x205   :  { %v587_v50 = vsel %vm396_vm0, %v543_v42, 0 }
 0x206   :  { %599 = vmatpush.bf16.xpose.msra.mxu2 %v593_v23 }
 0x20b   :  { %v1075_v31 = vpop.permute.xlu1 %1074  ;;  %v541_v44 = vpop.permute.xlu0 %540 }
 0x20c   :  { %v537_v49 = vpop.permute.xlu2 %536  ;;  %v584_v54 = vsel %vm396_vm0, %v541_v44, 0 }
 0x20e   :  { %600 = vmatpush.bf16.xpose.msra.mxu2 %v590_v45 }
 0x213   :  { %v1073_v46 = vpop.permute.xlu1 %1072  ;;  %v535_v48 = vpop.permute.xlu0 %534 }
 0x214   :  { %v1079_v51 = vpop.permute.xlu2 %1078  ;;  %1461 = vmatmul.msk.bf16.gmra.mxu1 %vm396_vm0, %v1719_v1  ;;  %v578_v1 = vsel %vm396_vm0, %v537_v49, 0  ;;  %v575_v58 = vsel %vm396_vm0, %v535_v48, 0 }
 0x215   :  { %1091 = vmatpush.bf16.msra.mxu3 %v1079_v51 }
 0x216   :  { %601 = vmatpush.bf16.xpose.msra.mxu2 %v587_v50 }
 0x21b   :  { %v1071_v43 = vpop.permute.xlu1 %1070  ;;  %v1077_v53 = vpop.permute.xlu0 %1076 }
 0x21c   :  { %1092 = vmatpush.bf16.msra.mxu3 %v1077_v53 }
 0x21e   :  { %602 = vmatpush.bf16.xpose.msra.mxu2 %v584_v54 }
 0x220   :  { %1093 = vmatpush.bf16.msra.mxu3 %v1075_v31 }
 0x223   :  { %v1069_v56 = vpop.permute.xlu1 %1068 }
 0x224   :  { %1462 = vmatmul.msk.bf16.gmra.mxu1 %vm396_vm0, %v1715_v59  ;;  %1094 = vmatpush.bf16.msra.mxu3 %v1073_v46  ;;  %v647_v59 = vlaneseq }
 0x226   :  { %603 = vmatpush.bf16.xpose.msra.mxu2 %v581_v55  ;;  %v1817_v60 = vshrl.u32 %v647_v59, 7  ;;  %v1819_v62 = vand.u32 127, %v647_v59 }
 0x228   :  { %1095 = vmatpush.bf16.msra.mxu3 %v1071_v43  ;;  %v666_v63 = vsub.s32 %v1819_v62, %v1817_v60  ;;  %v649_v0 = vadd.s32 8, %v1817_v60  ;;  %v650_v6 = vadd.s32 16, %v1817_v60  ;;  %v651_v12 = vadd.s32 24, %v1817_v60 }
 0x229   :  { %v652_v19 = vadd.s32 32, %v1817_v60  ;;  %v653_v27 = vadd.s32 40, %v1817_v60  ;;  %v654_v34 = vadd.s32 48, %v1817_v60  ;;  %v656_v41 = vadd.s32 64, %v1817_v60 }
 0x22a   :  { %vm1825_vm1 = vcmp.ge.s32.totalorder %v666_v63, 17  ;;  %v667_v3 = vsub.s32 %v1819_v62, %v649_v0  ;;  %v668_v9 = vsub.s32 %v1819_v62, %v650_v6  ;;  %v669_v15 = vsub.s32 %v1819_v62, %v651_v12 }
 0x22b   :  { %v1067_v57 = vpop.permute.xlu1 %1066  ;;  %v670_v25 = vsub.s32 %v1819_v62, %v652_v19  ;;  %v671_v32 = vsub.s32 %v1819_v62, %v653_v27  ;;  %v672_v37 = vsub.s32 %v1819_v62, %v654_v34  ;;  %v674_v23 = vsub.s32 %v1819_v62, %v656_v41 }
 0x22c   :  { %1096 = vmatpush.bf16.msra.mxu3 %v1069_v56  ;;  %vm1836_vm2 = vcmp.ge.s32.totalorder %v667_v3, 17  ;;  %vm1849_vm3 = vcmp.ge.s32.totalorder %v668_v9, 17  ;;  %vm1860_vm4 = vcmp.ge.s32.totalorder %v669_v15, 17  ;;  %v658_v49 = vadd.s32 80, %v1817_v60 }
 0x22d   :  { %vm1873_vm5 = vcmp.ge.s32.totalorder %v670_v25, 17  ;;  %vm1884_vm6 = vcmp.ge.s32.totalorder %v671_v32, 17  ;;  %vm1897_vm7 = vcmp.ge.s32.totalorder %v672_v37, 17  ;;  %vm1912_vm8 = vcmp.ge.s32.totalorder %v674_v23, 17 }
 0x22e   :  { %604 = vmatpush.bf16.xpose.msra.mxu2 %v578_v1  ;;  %v676_v48 = vsub.s32 %v1819_v62, %v658_v49  ;;  %v660_v53 = vadd.s32 96, %v1817_v60  ;;  %v655_v56 = vadd.s32 56, %v1817_v60 }
 0x230   :  { %1097 = vmatpush.bf16.msra.mxu3 %v1067_v57  ;;  %vm1925_vm9 = vcmp.ge.s32.totalorder %v676_v48, 17  ;;  %v678_v55 = vsub.s32 %v1819_v62, %v660_v53 }
 0x232   :  { %vm1939_vm10 = vcmp.ge.s32.totalorder %v678_v55, 17 }
 0x234   :  { %1463 = vmatmul.msk.bf16.gmra.mxu1 %vm396_vm0, %v1729_v16 }
 0x236   :  { %605 = vmatpush.bf16.xpose.msra.mxu2 %v575_v58  ;;  %v673_v58 = vsub.s32 %v1819_v62, %v655_v56 }
 0x238   :  { %vm1949_vm11 = vcmp.ge.s32.totalorder %v673_v58, 17 }
 0x23d   :  { %1465 = vmatmul.msk.bf16.vlgmr.msra.gmra.mxu2 %vm396_vm0, %v1733_v22 }
 0x244   :  { %1464 = vmatmul.msk.bf16.gmra.mxu1 %vm396_vm0, %v1725_v11 }
 0x24d   :  { %1466 = vmatmul.msk.bf16.gmra.mxu2 %vm396_vm0, %v1737_v30 }
 0x251   :  { %v454_v2 = vpop.f32.mrf.mxu1 }
 0x252   :  { %v1832_v11 = vsel %vm1825_vm1, -1e+30, %v454_v2 }
 0x253   :  { %762 = vmax.xlane.f32.xlu2 %v1832_v11 }
 0x259   :  { %v456_v7 = vpop.f32.mrf.mxu1 }
 0x25a   :  { %v1843_v8 = vsel %vm1836_vm2, -1e+30, %v456_v7  ;;  %v659_v7 = vadd.s32 88, %v1817_v60 }
 0x25b   :  { %764 = vmax.xlane.f32.xlu0 %v1843_v8 }
 0x25c   :  { %v677_v15 = vsub.s32 %v1819_v62, %v659_v7 }
 0x25d   :  { %1467 = vmatmul.msk.bf16.gmra.mxu2 %vm396_vm0, %v1743_v52 }
 0x25e   :  { %vm1976_vm13 = vcmp.ge.s32.totalorder %v677_v15, 17 }
 0x261   :  { %v459_v13 = vpop.f32.mrf.mxu1 }
 0x262   :  { %v1856_v14 = vsel %vm1849_vm3, -1e+30, %v459_v13 }
 0x263   :  { %766 = vmax.xlane.f32.xlu1 %v1856_v14 }
 0x269   :  { %v461_v20 = vpop.f32.mrf.mxu1 }
 0x26a   :  { %v1867_v24 = vsel %vm1860_vm4, -1e+30, %v461_v20  ;;  %v661_v20 = vadd.s32 104, %v1817_v60 }
 0x26b   :  { %768 = vmax.xlane.f32.xlu2 %v1867_v24 }
 0x26c   :  { %v679_v34 = vsub.s32 %v1819_v62, %v661_v20 }
 0x26d   :  { %1468 = vmatmul.msk.bf16.gmra.mxu2 %vm396_vm0, %v1754_v4 }
 0x26e   :  { %vm1992_vm14 = vcmp.ge.s32.totalorder %v679_v34, 17 }
 0x271   :  { %v464_v28 = vpop.f32.mrf.mxu1 }
 0x272   :  { %v1880_v29 = vsel %vm1873_vm5, -1e+30, %v464_v28 }
 0x273   :  { %770 = vmax.xlane.f32.xlu2 %v1880_v29 }
 0x279   :  { %v466_v35 = vpop.f32.mrf.mxu1 }
 0x27a   :  { %v1891_v36 = vsel %vm1884_vm6, -1e+30, %v466_v35 }
 0x27b   :  { %772 = vmax.xlane.f32.xlu0 %v1891_v36 }
 0x27d   :  { %1469 = vmatmul.msk.bf16.gmra.mxu2 %vm396_vm0, %v1770_v21 }
 0x281   :  { %v469_v39 = vpop.f32.mrf.mxu1 }
 0x282   :  { %v1903_v40 = vsel %vm1897_vm7, -1e+30, %v469_v39 }
 0x283   :  { %774 = vmax.xlane.f32.xlu2 %v1903_v40 }
 0x289   :  { %v471_v42 = vpop.f32.mrf.mxu1 }
 0x28a   :  { %v1956_v0 = vsel %vm1949_vm11, -1e+30, %v471_v42 }
 0x28d   :  { %1470 = vmatmul.msk.bf16.gmra.mxu2 %vm396_vm0, %v1739_v47 }
 0x28f   :  { %1201 = vrot.lane.b32.xlu0 %v1761_v17, %s1656_s14 }
 0x291   :  { %v474_v44 = vpop.f32.mrf.mxu1 }
 0x292   :  { %v1918_v45 = vsel %vm1912_vm8, -1e+30, %v474_v44 }
 0x293   :  { %778 = vmax.xlane.f32.xlu2 %v1918_v45 }
 0x299   :  { %v476_v46 = vpop.f32.mrf.mxu1 }
 0x29d   :  { %1471 = vmatmul.msk.bf16.gmra.mxu2 %vm396_vm0, %v1747_v61 }
 0x2a1   :  { %v479_v51 = vpop.f32.mrf.mxu1 }
 0x2a2   :  { %v1931_v43 = vsel %vm1925_vm9, -1e+30, %v479_v51 }
 0x2a3   :  { %782 = vmax.xlane.f32.xlu2 %v1931_v43 }
 0x2a9   :  { %v481_v54 = vpop.f32.mrf.mxu1 }
 0x2aa   :  { %v1986_v32 = vsel %vm1976_vm13, -1e+30, %v481_v54 }
 0x2ad   :  { %1472 = vmatmul.msk.bf16.gmra.mxu2 %vm396_vm0, %v1761_v17  ;;  %v657_v17 = vadd.s32 72, %v1817_v60 }
 0x2af   :  { %v675_v3 = vsub.s32 %v1819_v62, %v657_v17 }
 0x2b1   :  { %v484_v57 = vpop.f32.mrf.mxu1  ;;  %vm1960_vm12 = vcmp.ge.s32.totalorder %v675_v3, 17 }
 0x2b2   :  { %v1946_v59 = vsel %vm1939_vm10, -1e+30, %v484_v57  ;;  %v1969_v12 = vsel %vm1960_vm12, -1e+30, %v476_v46 }
 0x2b3   :  { %786 = vmax.xlane.f32.xlu2 %v1946_v59 }
 0x2b9   :  { %v486_v2 = vpop.f32.mrf.mxu1  ;;  %776 = vmax.xlane.f32.xlu0 %v1956_v0 }
 0x2ba   :  { %v2001_v41 = vsel %vm1992_vm14, -1e+30, %v486_v2 }
 0x2c0   :  { %v1965_v9 = vpop.f32.mrf.mxu2 }
 0x2c1   :  { %v1971_v13 = vpop.f32.mrf.mxu1  ;;  %780 = vmax.xlane.f32.xlu0 %v1969_v12 }
 0x2c2   :  { %790 = vmax.xlane.f32.xlu1 %v1971_v13 }
 0x2c6   :  { %v763_v25 = vpop.xlane.xlu2 %762 }
 0x2c7   :  { %v826_v27 = vsub.f32 %v1832_v11, %v763_v25 }
 0x2c8   :  { %v1982_v28 = vpop.f32.mrf.mxu2 }
 0x2c9   :  { %784 = vmax.xlane.f32.xlu0 %v1986_v32  ;;  %v858_v35 = vmul.f32 1.442695, %v826_v27 }
 0x2cb   :  { %1197 = vrot.lane.b32.xlu2 %v1739_v47, %s1656_s14  ;;  %1501 = vpow2.f32 %v858_v35 }
 0x2ce   :  { %v765_v60 = vpop.xlane.xlu0 %764 }
 0x2cf   :  { %v827_v11 = vsub.f32 %v1843_v8, %v765_v60  ;;  %v2028_v60 = vpop.f32.mrf.mxu1 }
 0x2d0   :  { %v1997_v39 = vpop.f32.mrf.mxu2 }
 0x2d1   :  { %v860_v42 = vmul.f32 1.442695, %v827_v11  ;;  %788 = vmax.xlane.f32.xlu0 %v2001_v41  ;;  %v2004_v62 = vpop.eup %1501 }
 0x2d2   :  { %v986_v49 = vpack.c.bf16 %v2004_v62, %v2004_v62 }
 0x2d3   :  { %1503 = vpow2.f32 %v860_v42 }
 0x2d4   :  { %v1034_v51 = vunpack.c.l.b16 %v986_v49 }
 0x2d6   :  { %v767_v47 = vpop.xlane.xlu1 %766 }
 0x2d7   :  { %v828_v23 = vsub.f32 %v1856_v14, %v767_v47 }
 0x2d8   :  { %v614_v44 = vpop.f32.mrf.mxu2 }
 0x2d9   :  { %v2009_v8 = vpop.eup %1503  ;;  %v862_v48 = vmul.f32 1.442695, %v828_v23 }
 0x2da   :  { %v987_v46 = vpack.c.bf16 %v2009_v8, %v2009_v8 }
 0x2db   :  { %1199 = vrot.lane.b32.xlu1 %v1747_v61, %s1656_s14  ;;  %1505 = vpow2.f32 %v862_v48 }
 0x2dc   :  { %v1035_v53 = vunpack.c.l.b16 %v987_v46 }
 0x2de   :  { %v769_v54 = vpop.xlane.xlu2 %768  ;;  %v1050_v55 = vpack.c.b16 %v1035_v53, %v1034_v51 }
 0x2df   :  { %v829_v14 = vsub.f32 %v1867_v24, %v769_v54  ;;  %v2042_v54 = vsel %vm1825_vm1, -1e+30, %v1965_v9 }
 0x2e0   :  { %v617_v56 = vpop.f32.mrf.mxu2  ;;  %1098 = vmatmul.bf16.vlgmr.msra.gmra.mxu3 %v1050_v55 }
 0x2e1   :  { %v864_v57 = vmul.f32 1.442695, %v829_v14  ;;  %v2016_v58 = vpop.eup %1505  ;;  %v2049_v14 = vsel %vm1860_vm4, -1e+30, %v614_v44  ;;  %v2067_v18 = vsel %vm1873_vm5, -1e+30, %v617_v56 }
 0x2e2   :  { %v988_v3 = vpack.c.bf16 %v2016_v58, %v2016_v58 }
 0x2e3   :  { %1507 = vpow2.f32 %v864_v57  ;;  %v2055_v57 = vsel %vm1836_vm2, -1e+30, %v1982_v28 }
 0x2e4   :  { %v1036_v20 = vunpack.c.l.b16 %v988_v3 }
 0x2e5   :  { %1195 = vrot.lane.b32.xlu0 %v1770_v21, %s1656_s14 }
 0x2e6   :  { %v771_v17 = vpop.xlane.xlu2 %770 }
 0x2e7   :  { %v830_v2 = vsub.f32 %v1880_v29, %v771_v17 }
 0x2e8   :  { %v619_v61 = vpop.f32.mrf.mxu2 }
 0x2e9   :  { %v2023_v7 = vpop.eup %1507  ;;  %v866_v15 = vmul.f32 1.442695, %v830_v2 }
 0x2ea   :  { %v989_v24 = vpack.c.bf16 %v2023_v7, %v2023_v7 }
 0x2eb   :  { %1509 = vpow2.f32 %v866_v15 }
 0x2ec   :  { %v1037_v25 = vunpack.c.l.b16 %v989_v24 }
 0x2ee   :  { %v773_v27 = vpop.xlane.xlu0 %772  ;;  %v1051_v34 = vpack.c.b16 %v1037_v25, %v1036_v20 }
 0x2ef   :  { %v831_v21 = vsub.f32 %v1891_v36, %v773_v27 }
 0x2f0   :  { %v622_v35 = vpop.f32.mrf.mxu2  ;;  %1103 = vmatmul.bf16.gmra.mxu3 %v1051_v34 }
 0x2f1   :  { %v868_v29 = vmul.f32 1.442695, %v831_v21  ;;  %v2031_v11 = vpop.eup %1509 }
 0x2f2   :  { %v990_v47 = vpack.c.bf16 %v2031_v11, %v2031_v11 }
 0x2f3   :  { %1511 = vpow2.f32 %v868_v29 }
 0x2f4   :  { %792 = vmax.xlane.f32.xlu2 %v2028_v60  ;;  %v1038_v36 = vunpack.c.l.b16 %v990_v47 }
 0x2f6   :  { %v775_v33 = vpop.xlane.xlu2 %774 }
 0x2f7   :  { %v832_v63 = vsub.f32 %v1903_v40, %v775_v33 }
 0x2f8   :  { %v624_v42 = vpop.f32.mrf.mxu2 }
 0x2f9   :  { %v2035_v23 = vpop.eup %1511  ;;  %v2074_v9 = vsel %vm1949_vm11, -1e+30, %v624_v42  ;;  %v870_v28 = vmul.f32 1.442695, %v832_v63 }
 0x2fa   :  { %v991_v49 = vpack.c.bf16 %v2035_v23, %v2035_v23 }
 0x2fb   :  { %1513 = vpow2.f32 %v870_v28 }
 0x2fc   :  { %v1039_v46 = vunpack.c.l.b16 %v991_v49 }
 0x2fe   :  { %v1052_v48 = vpack.c.b16 %v1039_v46, %v1038_v36 }
 0x300   :  { %v627_v51 = vpop.f32.mrf.mxu2  ;;  %1108 = vmatmul.bf16.gmra.mxu3 %v1052_v48 }
 0x301   :  { %v1202_v53 = vpop.permute.xlu0 %1201  ;;  %v2092_v38 = vsel %vm1912_vm8, -1e+30, %v627_v51  ;;  %v2108_v2 = vpop.eup %1513 }
 0x302   :  { %1211 = vmatpush.bf16.msrb.mxu3 %v1202_v53  ;;  %v992_v24 = vpack.c.bf16 %v2108_v2, %v2108_v2 }
 0x304   :  { %v1040_v34 = vunpack.c.l.b16 %v992_v24 }
 0x305   :  { %794 = vmax.xlane.f32.xlu1 %v2042_v54 }
 0x306   :  { %v779_v17 = vpop.xlane.xlu2 %778 }
 0x307   :  { %v834_v3 = vsub.f32 %v1918_v45, %v779_v17 }
 0x308   :  { %v629_v55 = vpop.f32.mrf.mxu2 }
 0x309   :  { %v874_v27 = vmul.f32 1.442695, %v834_v3 }
 0x30c   :  { %1193 = vrot.lane.b32.xlu2 %v1754_v4, %s1656_s14  ;;  %v2062_v4 = vsel %vm1884_vm6, -1e+30, %v619_v61 }
 0x30d   :  { %800 = vmax.xlane.f32.xlu1 %v2049_v14 }
 0x30f   :  { %796 = vmax.xlane.f32.xlu0 %v2055_v57 }
 0x310   :  { %v632_v16 = vpop.f32.mrf.mxu2 }
 0x311   :  { %v2105_v40 = vsel %vm1925_vm9, -1e+30, %v632_v16 }
 0x314   :  { %1191 = vrot.lane.b32.xlu2 %v1743_v52, %s1656_s14  ;;  %v2079_v52 = vsel %vm1897_vm7, -1e+30, %v622_v35 }
 0x315   :  { %804 = vmax.xlane.f32.xlu1 %v2062_v4 }
 0x316   :  { %v783_v1 = vpop.xlane.xlu2 %782 }
 0x317   :  { %802 = vmax.xlane.f32.xlu0 %v2067_v18  ;;  %v836_v36 = vsub.f32 %v1931_v43, %v783_v1 }
 0x318   :  { %v634_v5 = vpop.f32.mrf.mxu2 }
 0x31c   :  { %1189 = vrot.lane.b32.xlu2 %v1737_v30, %s1656_s14  ;;  %v2086_v30 = vsel %vm1960_vm12, -1e+30, %v629_v55  ;;  %v878_v55 = vmul.f32 1.442695, %v836_v36 }
 0x31d   :  { %808 = vmax.xlane.f32.xlu1 %v2074_v9 }
 0x31f   :  { %806 = vmax.xlane.f32.xlu0 %v2079_v52 }
 0x320   :  { %v637_v26 = vpop.f32.mrf.mxu2 }
 0x321   :  { %v2117_v50 = vsel %vm1939_vm10, -1e+30, %v637_v26 }
 0x324   :  { %1187 = vrot.lane.b32.xlu2 %v1733_v22, %s1656_s14  ;;  %v2099_v22 = vsel %vm1976_vm13, -1e+30, %v634_v5 }
 0x325   :  { %812 = vmax.xlane.f32.xlu1 %v2086_v30 }
 0x326   :  { %v787_v51 = vpop.xlane.xlu2 %786 }
 0x327   :  { %810 = vmax.xlane.f32.xlu0 %v2092_v38 }
 0x328   :  { %v2095_v44 = vpop.f32.mrf.mxu2 }
 0x329   :  { %v2145_v10 = vsel %vm1992_vm14, -1e+30, %v2095_v44 }
 0x32c   :  { %v777_v56 = vpop.xlane.xlu0 %776 }
 0x32d   :  { %v833_v6 = vsub.f32 %v1956_v0, %v777_v56  ;;  %816 = vmax.xlane.f32.xlu1 %v2099_v22  ;;  %v838_v56 = vsub.f32 %v1946_v59, %v787_v51 }
 0x32e   :  { %v1198_v33 = vpop.permute.xlu2 %1197 }
 0x32f   :  { %v872_v31 = vmul.f32 1.442695, %v833_v6  ;;  %814 = vmax.xlane.f32.xlu0 %v2105_v40  ;;  %v882_v17 = vmul.f32 1.442695, %v838_v56 }
 0x330   :  { %v2110_v61 = vpop.f32.mrf.mxu2 }
 0x331   :  { %1515 = vpow2.f32 %v872_v31 }
 0x334   :  { %v781_v19 = vpop.xlane.xlu0 %780 }
 0x335   :  { %v835_v0 = vsub.f32 %v1969_v12, %v781_v19  ;;  %822 = vmax.xlane.f32.xlu1 %v2110_v61  ;;  %v791_v46 = vpop.xlane.xlu1 %790 }
 0x337   :  { %v1516_v15 = vpop.eup %1515  ;;  %v876_v20 = vmul.f32 1.442695, %v835_v0  ;;  %818 = vmax.xlane.f32.xlu0 %v2117_v50 }
 0x338   :  { %v993_v25 = vpack.c.bf16 %v1516_v15, %v1516_v15  ;;  %v2123_v12 = vpop.f32.mrf.mxu2 }
 0x339   :  { %1517 = vpow2.f32 %v876_v20 }
 0x33a   :  { %v1041_v21 = vunpack.c.l.b16 %v993_v25  ;;  %1519 = vpow2.f32 %v874_v27 }
 0x33c   :  { %v1053_v45 = vpack.c.b16 %v1041_v21, %v1040_v34  ;;  %v785_v35 = vpop.xlane.xlu0 %784 }
 0x33d   :  { %924 = vadd.xlane.f32.xlu1 %v2009_v8  ;;  %v837_v47 = vsub.f32 %v1986_v32, %v785_v35  ;;  %v2137_v32 = vsel %vm1849_vm3, -1e+30, %v1997_v39 }
 0x33e   :  { %1113 = vmatmul.bf16.gmra.mxu3 %v1053_v45 }
 0x33f   :  { %824 = vmax.xlane.f32.xlu0 %v2123_v12  ;;  %v2126_v29 = vpop.eup %1517  ;;  %v880_v48 = vmul.f32 1.442695, %v837_v47 }
 0x340   :  { %v1520_v42 = vpop.eup %1519  ;;  %v995_v49 = vpack.c.bf16 %v2126_v29, %v2126_v29 }
 0x341   :  { %v994_v8 = vpack.c.bf16 %v1520_v42, %v1520_v42  ;;  %1521 = vpow2.f32 %v880_v48 }
 0x342   :  { %v1043_v53 = vunpack.c.l.b16 %v995_v49  ;;  %1523 = vpow2.f32 %v878_v55 }
 0x343   :  { %v1042_v16 = vunpack.c.l.b16 %v994_v8 }
 0x344   :  { %v789_v5 = vpop.xlane.xlu0 %788 }
 0x345   :  { %930 = vadd.xlane.f32.xlu1 %v2031_v11  ;;  %v1054_v26 = vpack.c.b16 %v1043_v53, %v1042_v16  ;;  %v839_v11 = vsub.f32 %v2001_v41, %v789_v5 }
 0x347   :  { %926 = vadd.xlane.f32.xlu0 %v2016_v58  ;;  %v1522_v58 = vpop.eup %1521  ;;  %v884_v63 = vmul.f32 1.442695, %v839_v11 }
 0x348   :  { %v1524_v28 = vpop.eup %1523  ;;  %v997_v39 = vpack.c.bf16 %v1522_v58, %v1522_v58 }
 0x349   :  { %1525 = vpow2.f32 %v884_v63  ;;  %v996_v41 = vpack.c.bf16 %v1524_v28, %v1524_v28 }
 0x34a   :  { %v1045_v31 = vunpack.c.l.b16 %v997_v39  ;;  %1527 = vpow2.f32 %v882_v17 }
 0x34b   :  { %v1044_v19 = vunpack.c.l.b16 %v996_v41 }
 0x34d   :  { %v1200_v43 = vpop.permute.xlu1 %1199  ;;  %798 = vmax.xlane.f32.xlu2 %v2137_v32  ;;  %936 = vadd.xlane.f32.xlu1 %v1516_v15  ;;  %v1055_v44 = vpack.c.b16 %v1045_v31, %v1044_v19 }
 0x34e   :  { %1118 = vmatmul.bf16.gmra.mxu3 %v1054_v26 }
 0x34f   :  { %1212 = vmatpush.bf16.msrb.mxu3 %v1200_v43  ;;  %932 = vadd.xlane.f32.xlu0 %v2035_v23  ;;  %v840_v23 = vsub.f32 %v1971_v13, %v791_v46  ;;  %v1526_v3 = vpop.eup %1525 }
 0x350   :  { %v1528_v59 = vpop.eup %1527  ;;  %v999_v0 = vpack.c.bf16 %v1526_v3, %v1526_v3 }
 0x351   :  { %v886_v37 = vmul.f32 1.442695, %v840_v23  ;;  %v998_v13 = vpack.c.bf16 %v1528_v59, %v1528_v59 }
 0x352   :  { %v1047_v25 = vunpack.c.l.b16 %v999_v0 }
 0x353   :  { %1213 = vmatpush.bf16.msrb.mxu3 %v1198_v33  ;;  %1529 = vpow2.f32 %v886_v37  ;;  %v1046_v34 = vunpack.c.l.b16 %v998_v13 }
 0x355   :  { %820 = vmax.xlane.f32.xlu2 %v2145_v10  ;;  %942 = vadd.xlane.f32.xlu1 %v1524_v28  ;;  %v1056_v21 = vpack.c.b16 %v1047_v25, %v1046_v34 }
 0x357   :  { %v1196_v6 = vpop.permute.xlu0 %1195  ;;  %938 = vadd.xlane.f32.xlu0 %v1520_v42 }
 0x358   :  { %1214 = vmatpush.bf16.msrb.mxu3 %v1196_v6 }
 0x359   :  { %v1530_v24 = vpop.eup %1529 }
 0x35d   :  { %922 = vadd.xlane.f32.xlu2 %v2004_v62  ;;  %948 = vadd.xlane.f32.xlu1 %v1526_v3 }
 0x35e   :  { %1123 = vmatmul.bf16.gmra.mxu3 %v1055_v44 }
 0x35f   :  { %944 = vadd.xlane.f32.xlu0 %v1522_v58 }
 0x365   :  { %928 = vadd.xlane.f32.xlu2 %v2023_v7  ;;  %v1000_v7 = vpack.c.bf16 %v1530_v24, %v1530_v24 }
 0x367   :  { %950 = vadd.xlane.f32.xlu0 %v1530_v24  ;;  %v793_v15 = vpop.xlane.xlu2 %792  ;;  %v1048_v49 = vunpack.c.l.b16 %v1000_v7 }
 0x368   :  { %v841_v20 = vsub.f32 %v2028_v60, %v793_v15 }
 0x36a   :  { %v888_v27 = vmul.f32 1.442695, %v841_v20 }
 0x36c   :  { %1531 = vpow2.f32 %v888_v27 }
 0x36d   :  { %934 = vadd.xlane.f32.xlu2 %v2108_v2 }
 0x36e   :  { %1128 = vmatmul.bf16.gmra.mxu3 %v1056_v21 }
 0x36f   :  { %v1194_v62 = vpop.permute.xlu2 %1193 }
 0x370   :  { %1215 = vmatpush.bf16.msrb.mxu3 %v1194_v62 }
 0x372   :  { %v1532_v45 = vpop.eup %1531 }
 0x373   :  { %v1001_v1 = vpack.c.bf16 %v1532_v45, %v1532_v45 }
 0x375   :  { %940 = vadd.xlane.f32.xlu2 %v2126_v29  ;;  %v1049_v47 = vunpack.c.l.b16 %v1001_v1 }
 0x377   :  { %v1192_v35 = vpop.permute.xlu2 %1191  ;;  %v1057_v46 = vpack.c.b16 %v1049_v47, %v1048_v49 }
 0x378   :  { %v795_v42 = vpop.xlane.xlu1 %794  ;;  %1216 = vmatpush.bf16.msrb.mxu3 %v1192_v35 }
 0x379   :  { %v842_v60 = vsub.f32 %v2042_v54, %v795_v42  ;;  %v2158_v54 = vpop.f32.mrf.mxu3 }
 0x37b   :  { %v890_v36 = vmul.f32 1.442695, %v842_v60 }
 0x37d   :  { %1533 = vpow2.f32 %v890_v36  ;;  %946 = vadd.xlane.f32.xlu2 %v1528_v59 }
 0x37e   :  { %1133 = vmatmul.bf16.gmra.mxu3 %v1057_v46 }
 0x37f   :  { %v1190_v2 = vpop.permute.xlu2 %1189 }
 0x380   :  { %v801_v8 = vpop.xlane.xlu1 %800  ;;  %1217 = vmatpush.bf16.msrb.mxu3 %v1190_v2 }
 0x381   :  { %v845_v48 = vsub.f32 %v2049_v14, %v801_v8  ;;  %v1101_v23 = vpop.f32.mrf.mxu3 }
 0x382   :  { %v797_v51 = vpop.xlane.xlu0 %796 }
 0x383   :  { %v1534_v29 = vpop.eup %1533  ;;  %v896_v53 = vmul.f32 1.442695, %v845_v48  ;;  %v843_v55 = vsub.f32 %v2055_v57, %v797_v51 }
 0x384   :  { %954 = vadd.xlane.f32.xlu1 %v1534_v29  ;;  %v1002_v57 = vpack.c.bf16 %v1534_v29, %v1534_v29 }
 0x385   :  { %1535 = vpow2.f32 %v896_v53  ;;  %v892_v16 = vmul.f32 1.442695, %v843_v55  ;;  %952 = vadd.xlane.f32.xlu2 %v1532_v45 }
 0x386   :  { %v1155_v41 = vunpack.c.l.b16 %v1002_v57 }
 0x387   :  { %1537 = vpow2.f32 %v892_v16  ;;  %v1188_v5 = vpop.permute.xlu2 %1187 }
 0x388   :  { %v805_v26 = vpop.xlane.xlu1 %804  ;;  %1218 = vmatpush.bf16.msrb.mxu3 %v1188_v5 }
 0x389   :  { %v847_v43 = vsub.f32 %v2062_v4, %v805_v26  ;;  %v1104_v27 = vpop.f32.mrf.mxu3 }
 0x38a   :  { %v803_v11 = vpop.xlane.xlu0 %802 }
 0x38b   :  { %v2161_v58 = vpop.eup %1535  ;;  %v900_v14 = vmul.f32 1.442695, %v847_v43  ;;  %v846_v33 = vsub.f32 %v2067_v18, %v803_v11 }
 0x38c   :  { %960 = vadd.xlane.f32.xlu1 %v2161_v58 }
 0x38d   :  { %v1538_v63 = vpop.eup %1537  ;;  %1539 = vpow2.f32 %v900_v14  ;;  %v898_v28 = vmul.f32 1.442695, %v846_v33 }
 0x38e   :  { %956 = vadd.xlane.f32.xlu0 %v1538_v63  ;;  %v1003_v39 = vpack.c.bf16 %v1538_v63, %v1538_v63 }
 0x38f   :  { %1541 = vpow2.f32 %v898_v28 }
 0x390   :  { %v809_v56 = vpop.xlane.xlu1 %808  ;;  %v1156_v6 = vunpack.c.l.b16 %v1003_v39 }
 0x391   :  { %v849_v4 = vsub.f32 %v2074_v9, %v809_v56  ;;  %v2191_v49 = vpop.f32.mrf.mxu3 }
 0x392   :  { %v807_v31 = vpop.xlane.xlu0 %806  ;;  %v1171_v17 = vpack.c.b16 %v1156_v6, %v1155_v41 }
 0x393   :  { %v2166_v19 = vpop.eup %1539  ;;  %v904_v18 = vmul.f32 1.442695, %v849_v4  ;;  %v848_v3 = vsub.f32 %v2079_v52, %v807_v31 }
 0x394   :  { %1219 = vmatmul.bf16.vlgmr.msrb.gmra.mxu3 %v1171_v17  ;;  %v1007_v37 = vpack.c.bf16 %v2166_v19, %v2166_v19 }
 0x395   :  { %v1542_v44 = vpop.eup %1541  ;;  %1543 = vpow2.f32 %v904_v18  ;;  %v902_v59 = vmul.f32 1.442695, %v848_v3 }
 0x396   :  { %962 = vadd.xlane.f32.xlu0 %v1542_v44  ;;  %v1006_v0 = vpack.c.bf16 %v1542_v44, %v1542_v44  ;;  %v2173_v9 = vunpack.c.l.b16 %v1007_v37 }
 0x397   :  { %1545 = vpow2.f32 %v902_v59 }
 0x398   :  { %v813_v24 = vpop.xlane.xlu1 %812  ;;  %v2171_v13 = vunpack.c.l.b16 %v1006_v0 }
 0x399   :  { %v851_v15 = vsub.f32 %v2086_v30, %v813_v24 }
 0x39a   :  { %v2176_v20 = vpop.xlane.xlu0 %810  ;;  %v1173_v52 = vpack.c.b16 %v2173_v9, %v2171_v13 }
 0x39b   :  { %v1544_v25 = vpop.eup %1543  ;;  %v908_v34 = vmul.f32 1.442695, %v851_v15 }
 0x39c   :  { %v1009_v21 = vpack.c.bf16 %v1544_v25, %v1544_v25 }
 0x39d   :  { %v1546_v62 = vpop.eup %1545  ;;  %1547 = vpow2.f32 %v908_v34 }
 0x39e   :  { %968 = vadd.xlane.f32.xlu0 %v1544_v25  ;;  %966 = vadd.xlane.f32.xlu1 %v1546_v62  ;;  %v1008_v45 = vpack.c.bf16 %v1546_v62, %v1546_v62  ;;  %v2184_v35 = vunpack.c.l.b16 %v1009_v21  ;;  %v1005_v62 = vpack.c.bf16 %v2161_v58, %v2161_v58 }
 0x3a0   :  { %v2180_v1 = vpop.xlane.xlu1 %816  ;;  %v2182_v7 = vunpack.c.l.b16 %v1008_v45 }
 0x3a2   :  { %v815_v30 = vpop.xlane.xlu0 %814  ;;  %v1174_v42 = vpack.c.b16 %v2184_v35, %v2182_v7 }
 0x3a3   :  { %v852_v47 = vsub.f32 %v2105_v40, %v815_v30  ;;  %v2189_v60 = vpop.eup %1547  ;;  %v1109_v40 = vpop.f32.mrf.mxu3 }
 0x3a5   :  { %v910_v36 = vmul.f32 1.442695, %v852_v47 }
 0x3a6   :  { %972 = vadd.xlane.f32.xlu1 %v2189_v60 }
 0x3a7   :  { %1549 = vpow2.f32 %v910_v36  ;;  %v1158_v36 = vunpack.c.l.b16 %v1005_v62 }
 0x3a8   :  { %v823_v46 = vpop.xlane.xlu1 %822 }
 0x3a9   :  { %v856_v8 = vsub.f32 %v2110_v61, %v823_v46 }
 0x3aa   :  { %v819_v2 = vpop.xlane.xlu0 %818 }
 0x3ab   :  { %v854_v48 = vsub.f32 %v2117_v50, %v819_v2  ;;  %v918_v53 = vmul.f32 1.442695, %v856_v8  ;;  %v1111_v33 = vpop.f32.mrf.mxu3 }
 0x3ad   :  { %v2196_v51 = vpop.eup %1549  ;;  %v914_v29 = vmul.f32 1.442695, %v854_v48 }
 0x3ae   :  { %974 = vadd.xlane.f32.xlu0 %v2196_v51 }
 0x3af   :  { %1551 = vpow2.f32 %v914_v29 }
 0x3b0   :  { %v925_v55 = vpop.xlane.xlu1 %924 }
 0x3b1   :  { %1553 = vrcp.f32 %v925_v55  ;;  %v853_v55 = vsub.f32 %v2099_v22, %v2180_v1 }
 0x3b2   :  { %v825_v16 = vpop.xlane.xlu0 %824  ;;  %1555 = vpow2.f32 %v918_v53 }
 0x3b3   :  { %v857_v5 = vsub.f32 %v2123_v12, %v825_v16 }
 0x3b5   :  { %v2200_v26 = vpop.eup %1551  ;;  %v920_v43 = vmul.f32 1.442695, %v857_v5 }
 0x3b6   :  { %978 = vadd.xlane.f32.xlu1 %v2200_v26  ;;  %v1014_v53 = vpack.c.bf16 %v2200_v26, %v2200_v26 }
 0x3b7   :  { %v1554_v61 = vpop.eup %1553  ;;  %1557 = vpow2.f32 %v920_v43 }
 0x3b8   :  { %v1293_v50 = vmul.f32 %v1554_v61, %v1101_v23  ;;  %v931_v11 = vpop.xlane.xlu1 %930  ;;  %v2203_v14 = vpop.eup %1555  ;;  %v2250_v16 = vunpack.c.l.b16 %v1014_v53 }
 0x3b9   :  { %1559 = vrcp.f32 %v931_v11  ;;  %v1016_v12 = vpack.c.bf16 %v2203_v14, %v2203_v14  ;;  %v912_v11 = vmul.f32 1.442695, %v853_v55 }
 0x3ba   :  { %1325 = vst.msk [vmem:[%s2382_s2 + $0x8] sm:$0xff] %vm396_vm0, %v1293_v50  ;;  %v927_v57 = vpop.xlane.xlu0 %926 }
 0x3bb   :  { %1561 = vrcp.f32 %v927_v57  ;;  %v2211_v23 = vunpack.c.l.b16 %v1016_v12 }
 0x3bd   :  { %v1558_v63 = vpop.eup %1557 }
 0x3be   :  { %984 = vadd.xlane.f32.xlu1 %v1558_v63  ;;  %v1017_v28 = vpack.c.bf16 %v1558_v63, %v1558_v63 }
 0x3bf   :  { %v1560_v39 = vpop.eup %1559 }
 0x3c0   :  { %v1296_v56 = vmul.f32 %v1560_v39, %v1109_v40  ;;  %v937_v41 = vpop.xlane.xlu1 %936  ;;  %v799_v6 = vpop.xlane.xlu2 %798  ;;  %v2213_v4 = vunpack.c.l.b16 %v1017_v28 }
 0x3c1   :  { %v1562_v31 = vpop.eup %1561  ;;  %v844_v17 = vsub.f32 %v2137_v32, %v799_v6  ;;  %v2216_v18 = vpop.f32.mrf.mxu3  ;;  %1563 = vrcp.f32 %v937_v41 }
 0x3c2   :  { %1328 = vst.msk [vmem:[%s2382_s2 + $0x20] sm:$0xff] %vm396_vm0, %v1296_v56  ;;  %v1294_v3 = vmul.f32 %v1562_v31, %v1104_v27  ;;  %v933_v37 = vpop.xlane.xlu0 %932  ;;  %v1178_v44 = vpack.c.b16 %v2213_v4, %v2211_v23 }
 0x3c3   :  { %v894_v59 = vmul.f32 1.442695, %v844_v17  ;;  %1565 = vrcp.f32 %v933_v37 }
 0x3c4   :  { %1326 = vst.msk [vmem:[%s2382_s2 + $0x10] sm:$0xff] %vm396_vm0, %v1294_v3 }
 0x3c5   :  { %1567 = vpow2.f32 %v894_v59 }
 0x3c7   :  { %v1564_v32 = vpop.eup %1563 }
 0x3c8   :  { %v821_v0 = vpop.xlane.xlu2 %820  ;;  %v943_v26 = vpop.xlane.xlu1 %942 }
 0x3c9   :  { %v1566_v24 = vpop.eup %1565  ;;  %v855_v15 = vsub.f32 %v2145_v10, %v821_v0  ;;  %v1116_v25 = vpop.f32.mrf.mxu3  ;;  %v850_v10 = vsub.f32 %v2092_v38, %v2176_v20 }
 0x3ca   :  { %v1297_v27 = vmul.f32 %v1566_v24, %v1111_v33  ;;  %v1299_v34 = vmul.f32 %v1564_v32, %v1116_v25  ;;  %v939_v21 = vpop.xlane.xlu0 %938 }
 0x3cb   :  { %v1568_v45 = vpop.eup %1567  ;;  %v916_v30 = vmul.f32 1.442695, %v855_v15  ;;  %1569 = vrcp.f32 %v939_v21  ;;  %v906_v48 = vmul.f32 1.442695, %v850_v10 }
 0x3cc   :  { %1329 = vst.msk [vmem:[%s2382_s2 + $0x28] sm:$0xff] %vm396_vm0, %v1297_v27  ;;  %958 = vadd.xlane.f32.xlu2 %v1568_v45  ;;  %v1004_v47 = vpack.c.bf16 %v1568_v45, %v1568_v45  ;;  %v1011_v27 = vpack.c.bf16 %v2189_v60, %v2189_v60  ;;  %v1012_v60 = vpack.c.bf16 %v2196_v51, %v2196_v51 }
 0x3cd   :  { %1571 = vpow2.f32 %v916_v30  ;;  %1331 = vst.msk [vmem:[%s2382_s2 + $0x38] sm:$0xff] %vm396_vm0, %v1299_v34 }
 0x3ce   :  { %v1157_v58 = vunpack.c.l.b16 %v1004_v47  ;;  %v1164_v35 = vunpack.c.l.b16 %v1011_v27 }
 0x3d0   :  { %v923_v46 = vpop.xlane.xlu2 %922  ;;  %v1172_v2 = vpack.c.b16 %v1158_v36, %v1157_v58  ;;  %v1165_v36 = vunpack.c.l.b16 %v1012_v60 }
 0x3d1   :  { %v1570_v8 = vpop.eup %1569  ;;  %v1119_v29 = vpop.f32.mrf.mxu3  ;;  %1573 = vrcp.f32 %v923_v46 }
 0x3d2   :  { %v1300_v40 = vmul.f32 %v1570_v8, %v1119_v29  ;;  %1224 = vmatmul.bf16.gmra.mxu3 %v1172_v2  ;;  %1575 = vpow2.f32 %v906_v48  ;;  %v945_v1 = vpop.xlane.xlu0 %944 }
 0x3d3   :  { %v1572_v38 = vpop.eup %1571 }
 0x3d4   :  { %1332 = vst.msk [vmem:[%s2382_s2 + $0x40] sm:$0xff] %vm396_vm0, %v1300_v40  ;;  %964 = vadd.xlane.f32.xlu2 %v2166_v19  ;;  %980 = vadd.xlane.f32.xlu0 %v1572_v38  ;;  %v1015_v20 = vpack.c.bf16 %v1572_v38, %v1572_v38 }
 0x3d6   :  { %v2252_v5 = vunpack.c.l.b16 %v1015_v20 }
 0x3d7   :  { %v1574_v43 = vpop.eup %1573 }
 0x3d8   :  { %v929_v61 = vpop.xlane.xlu2 %928  ;;  %v1177_v50 = vpack.c.b16 %v2252_v5, %v2250_v16  ;;  %v1292_v33 = vmul.f32 %v1574_v43, %v2158_v54  ;;  %v1576_v57 = vpop.eup %1575 }
 0x3d9   :  { %1577 = vrcp.f32 %v929_v61  ;;  %v1121_v19 = vpop.f32.mrf.mxu3 }
 0x3da   :  { %1579 = vrcp.f32 %v943_v26  ;;  %1324 = vst.msk [vmem:[%s2382_s2] sm:$0xff] %vm396_vm0, %v1292_v33  ;;  %v951_v32 = vpop.xlane.xlu0 %950 }
 0x3db   :  { %1581 = vpow2.f32 %v912_v11 }
 0x3dc   :  { %970 = vadd.xlane.f32.xlu2 %v1576_v57 }
 0x3df   :  { %v1578_v22 = vpop.eup %1577 }
 0x3e0   :  { %v1295_v12 = vmul.f32 %v1578_v22, %v2191_v49  ;;  %v935_v63 = vpop.xlane.xlu2 %934  ;;  %v1580_v28 = vpop.eup %1579 }
 0x3e1   :  { %1583 = vrcp.f32 %v935_v63  ;;  %v1124_v39 = vpop.f32.mrf.mxu3  ;;  %v1582_v56 = vpop.eup %1581 }
 0x3e2   :  { %1327 = vst.msk [vmem:[%s2382_s2 + $0x18] sm:$0xff] %vm396_vm0, %v1295_v12  ;;  %v1302_v54 = vmul.f32 %v1580_v28, %v1124_v39  ;;  %1229 = vmatmul.bf16.gmra.mxu3 %v1173_v52  ;;  %1585 = vrcp.f32 %v945_v1  ;;  %v949_v52 = vpop.xlane.xlu1 %948  ;;  %v1013_v58 = vpack.c.bf16 %v1582_v56, %v1582_v56 }
 0x3e4   :  { %1334 = vst.msk [vmem:[%s2382_s2 + $0x50] sm:$0xff] %vm396_vm0, %v1302_v54  ;;  %976 = vadd.xlane.f32.xlu2 %v1582_v56  ;;  %v1166_v2 = vunpack.c.l.b16 %v1013_v58 }
 0x3e6   :  { %v1176_v8 = vpack.c.b16 %v1166_v2, %v1165_v36 }
 0x3e7   :  { %v1584_v49 = vpop.eup %1583 }
 0x3e8   :  { %v1298_v41 = vmul.f32 %v1584_v49, %v2216_v18  ;;  %v941_v6 = vpop.xlane.xlu2 %940  ;;  %v1586_v31 = vpop.eup %1585 }
 0x3e9   :  { %1587 = vrcp.f32 %v941_v6  ;;  %v1126_v17 = vpop.f32.mrf.mxu3 }
 0x3ea   :  { %1330 = vst.msk [vmem:[%s2382_s2 + $0x30] sm:$0xff] %vm396_vm0, %v1298_v41  ;;  %v1303_v13 = vmul.f32 %v1586_v31, %v1126_v17 }
 0x3ec   :  { %1335 = vst.msk [vmem:[%s2382_s2 + $0x58] sm:$0xff] %vm396_vm0, %v1303_v13  ;;  %982 = vadd.xlane.f32.xlu2 %v2203_v14  ;;  %v1010_v14 = vpack.c.bf16 %v1576_v57, %v1576_v57 }
 0x3ee   :  { %v1163_v7 = vunpack.c.l.b16 %v1010_v14 }
 0x3ef   :  { %v1588_v9 = vpop.eup %1587 }
 0x3f0   :  { %v1301_v18 = vmul.f32 %v1588_v9, %v1121_v19  ;;  %v947_v3 = vpop.xlane.xlu2 %946  ;;  %v1175_v34 = vpack.c.b16 %v1164_v35, %v1163_v7 }
 0x3f1   :  { %1589 = vrcp.f32 %v947_v3  ;;  %v1129_v37 = vpop.f32.mrf.mxu3 }
 0x3f2   :  { %1333 = vst.msk [vmem:[%s2382_s2 + $0x48] sm:$0xff] %vm396_vm0, %v1301_v18  ;;  %1234 = vmatmul.bf16.gmra.mxu3 %v1174_v42  ;;  %1591 = vrcp.f32 %v949_v52 }
 0x3f3   :  { %1593 = vrcp.f32 %v951_v32 }
 0x3f7   :  { %v1590_v59 = vpop.eup %1589  ;;  %v955_v46 = vpop.xlane.xlu1 %954 }
 0x3f8   :  { %v1304_v0 = vmul.f32 %v1590_v59, %v1129_v37  ;;  %v1592_v24 = vpop.eup %1591  ;;  %v953_v42 = vpop.xlane.xlu2 %952 }
 0x3f9   :  { %v1131_v15 = vpop.f32.mrf.mxu3  ;;  %v1594_v21 = vpop.eup %1593  ;;  %1595 = vrcp.f32 %v953_v42 }
 0x3fa   :  { %1336 = vst.msk [vmem:[%s2382_s2 + $0x60] sm:$0xff] %vm396_vm0, %v1304_v0  ;;  %v1305_v25 = vmul.f32 %v1592_v24, %v1131_v15  ;;  %1597 = vrcp.f32 %v955_v46 }
 0x3fc   :  { %1337 = vst.msk [vmem:[%s2382_s2 + $0x68] sm:$0xff] %vm396_vm0, %v1305_v25 }
 0x3ff   :  { %v1596_v30 = vpop.eup %1595  ;;  %v961_v43 = vpop.xlane.xlu1 %960 }
 0x400   :  { %v1598_v29 = vpop.eup %1597 }
 0x401   :  { %v1134_v62 = vpop.f32.mrf.mxu3  ;;  %v957_v48 = vpop.xlane.xlu0 %956 }
 0x402   :  { %v1306_v45 = vmul.f32 %v1594_v21, %v1134_v62  ;;  %1239 = vmatmul.bf16.gmra.mxu3 %v1175_v34  ;;  %1599 = vrcp.f32 %v957_v48 }
 0x404   :  { %1338 = vst.msk [vmem:[%s2382_s2 + $0x70] sm:$0xff] %vm396_vm0, %v1306_v45 }
 0x408   :  { %v1600_v51 = vpop.eup %1599 }
 0x409   :  { %v1136_v47 = vpop.f32.mrf.mxu3  ;;  %v963_v33 = vpop.xlane.xlu0 %962 }
 0x40a   :  { %v1307_v10 = vmul.f32 %v1596_v30, %v1136_v47 }
 0x40c   :  { %1339 = vst.msk [vmem:[%s2382_s2 + $0x78] sm:$0xff] %vm396_vm0, %v1307_v10 }
 0x411   :  { %v967_v57 = vpop.xlane.xlu1 %966  ;;  %v969_v63 = vpop.xlane.xlu0 %968 }
 0x412   :  { %1244 = vmatmul.bf16.gmra.mxu3 %v1176_v8 }
 0x417   :  { %v1220_v40 = vpop.f32.mrf.mxu3 }
 0x418   :  { %v1308_v53 = vmul.f32 %v1598_v29, %v1220_v40 }
 0x419   :  { %v973_v31 = vpop.xlane.xlu1 %972 }
 0x41a   :  { %1340 = vst.msk [vmem:[%s2382_s2 + $0x80] sm:$0xff] %vm396_vm0, %v1308_v53 }
 0x41f   :  { %v1222_v38 = vpop.f32.mrf.mxu3 }
 0x420   :  { %v1309_v20 = vmul.f32 %v1600_v51, %v1222_v38 }
 0x421   :  { %v975_v52 = vpop.xlane.xlu0 %974 }
 0x422   :  { %1341 = vst.msk [vmem:[%s2382_s2 + $0x88] sm:$0xff] %vm396_vm0, %v1309_v20  ;;  %1249 = vmatmul.bf16.gmra.mxu3 %v1177_v50 }
 0x429   :  { %v979_v24 = vpop.xlane.xlu1 %978 }
 0x431   :  { %v985_v30 = vpop.xlane.xlu1 %984 }
 0x432   :  { %1254 = vmatmul.bf16.gmra.mxu3 %v1178_v44 }
 0x43f   :  { %v959_v55 = vpop.xlane.xlu2 %958 }
 0x440   :  { %1601 = vrcp.f32 %v959_v55 }
 0x441   :  { %1603 = vrcp.f32 %v961_v43 }
 0x442   :  { %1605 = vrcp.f32 %v963_v33 }
 0x446   :  { %v1602_v26 = vpop.eup %1601 }
 0x447   :  { %v1604_v19 = vpop.eup %1603  ;;  %v965_v23 = vpop.xlane.xlu2 %964 }
 0x448   :  { %v1606_v4 = vpop.eup %1605  ;;  %1607 = vrcp.f32 %v965_v23  ;;  %v981_v7 = vpop.xlane.xlu0 %980 }
 0x449   :  { %1609 = vrcp.f32 %v967_v57 }
 0x44a   :  { %1611 = vrcp.f32 %v969_v63 }
 0x44e   :  { %v1608_v22 = vpop.eup %1607 }
 0x44f   :  { %v1610_v28 = vpop.eup %1609  ;;  %v971_v56 = vpop.xlane.xlu2 %970 }
 0x450   :  { %v1612_v49 = vpop.eup %1611  ;;  %1613 = vrcp.f32 %v971_v56 }
 0x451   :  { %1615 = vrcp.f32 %v973_v31 }
 0x452   :  { %1617 = vrcp.f32 %v975_v52 }
 0x455   :  { %v1225_v61 = vpop.f32.mrf.mxu3 }
 0x456   :  { %v1310_v11 = vmul.f32 %v1602_v26, %v1225_v61  ;;  %v1614_v17 = vpop.eup %1613 }
 0x457   :  { %v1616_v18 = vpop.eup %1615  ;;  %v977_v59 = vpop.xlane.xlu2 %976 }
 0x458   :  { %1342 = vst.msk [vmem:[%s2382_s2 + $0x90] sm:$0xff] %vm396_vm0, %v1310_v11  ;;  %v1618_v32 = vpop.eup %1617  ;;  %1619 = vrcp.f32 %v977_v59 }
 0x459   :  { %1621 = vrcp.f32 %v979_v24 }
 0x45a   :  { %1623 = vrcp.f32 %v981_v7 }
 0x45d   :  { %v1227_v16 = vpop.f32.mrf.mxu3 }
 0x45e   :  { %v1311_v5 = vmul.f32 %v1604_v19, %v1227_v16  ;;  %v1620_v15 = vpop.eup %1619 }
 0x45f   :  { %v1622_v35 = vpop.eup %1621  ;;  %v983_v21 = vpop.xlane.xlu2 %982 }
 0x460   :  { %1343 = vst.msk [vmem:[%s2382_s2 + $0x98] sm:$0xff] %vm396_vm0, %v1311_v5  ;;  %v1624_v62 = vpop.eup %1623  ;;  %1625 = vrcp.f32 %v983_v21 }
 0x461   :  { %1627 = vrcp.f32 %v985_v30 }
 0x465   :  { %v1230_v44 = vpop.f32.mrf.mxu3 }
 0x466   :  { %v1312_v50 = vmul.f32 %v1606_v4, %v1230_v44  ;;  %v1626_v47 = vpop.eup %1625 }
 0x467   :  { %v1628_v36 = vpop.eup %1627 }
 0x468   :  { %1344 = vst.msk [vmem:[%s2382_s2 + $0xa0] sm:$0xff] %vm396_vm0, %v1312_v50 }
 0x46d   :  { %v1232_v1 = vpop.f32.mrf.mxu3 }
 0x46e   :  { %v1313_v12 = vmul.f32 %v1608_v22, %v1232_v1 }
 0x470   :  { %1345 = vst.msk [vmem:[%s2382_s2 + $0xa8] sm:$0xff] %vm396_vm0, %v1313_v12 }
 0x475   :  { %v1235_v39 = vpop.f32.mrf.mxu3 }
 0x476   :  { %v1314_v54 = vmul.f32 %v1610_v28, %v1235_v39 }
 0x478   :  { %1346 = vst.msk [vmem:[%s2382_s2 + $0xb0] sm:$0xff] %vm396_vm0, %v1314_v54 }
 0x47d   :  { %v1237_v41 = vpop.f32.mrf.mxu3 }
 0x47e   :  { %v1315_v6 = vmul.f32 %v1612_v49, %v1237_v41 }
 0x480   :  { %1347 = vst.msk [vmem:[%s2382_s2 + $0xb8] sm:$0xff] %vm396_vm0, %v1315_v6 }
 0x485   :  { %v1240_v13 = vpop.f32.mrf.mxu3 }
 0x486   :  { %v1316_v9 = vmul.f32 %v1614_v17, %v1240_v13 }
 0x488   :  { %1348 = vst.msk [vmem:[%s2382_s2 + $0xc0] sm:$0xff] %vm396_vm0, %v1316_v9 }
 0x48d   :  { %v1242_v3 = vpop.f32.mrf.mxu3 }
 0x48e   :  { %v1317_v37 = vmul.f32 %v1616_v18, %v1242_v3 }
 0x490   :  { %1349 = vst.msk [vmem:[%s2382_s2 + $0xc8] sm:$0xff] %vm396_vm0, %v1317_v37 }
 0x495   :  { %v1245_v0 = vpop.f32.mrf.mxu3 }
 0x496   :  { %v1318_v14 = vmul.f32 %v1618_v32, %v1245_v0 }
 0x498   :  { %1350 = vst.msk [vmem:[%s2382_s2 + $0xd0] sm:$0xff] %vm396_vm0, %v1318_v14 }
 0x49d   :  { %v1247_v25 = vpop.f32.mrf.mxu3 }
 0x49e   :  { %v1319_v27 = vmul.f32 %v1620_v15, %v1247_v25 }
 0x4a0   :  { %1351 = vst.msk [vmem:[%s2382_s2 + $0xd8] sm:$0xff] %vm396_vm0, %v1319_v27 }
 0x4a5   :  { %v1250_v42 = vpop.f32.mrf.mxu3 }
 0x4a6   :  { %v1320_v34 = vmul.f32 %v1622_v35, %v1250_v42 }
 0x4a8   :  { %1352 = vst.msk [vmem:[%s2382_s2 + $0xe0] sm:$0xff] %vm396_vm0, %v1320_v34 }
 0x4ad   :  { %v1252_v45 = vpop.f32.mrf.mxu3 }
 0x4ae   :  { %v1321_v60 = vmul.f32 %v1624_v62, %v1252_v45 }
 0x4b0   :  { %1353 = vst.msk [vmem:[%s2382_s2 + $0xe8] sm:$0xff] %vm396_vm0, %v1321_v60 }
 0x4b5   :  { %v1255_v10 = vpop.f32.mrf.mxu3 }
 0x4b6   :  { %v1322_v58 = vmul.f32 %v1626_v47, %v1255_v10 }
 0x4b8   :  { %1354 = vst.msk [vmem:[%s2382_s2 + $0xf0] sm:$0xff] %vm396_vm0, %v1322_v58 }
 0x4bd   :  { %v1257_v46 = vpop.f32.mrf.mxu3 }
 0x4be   :  { %v1323_v2 = vmul.f32 %v1628_v36, %v1257_v46 }
 0x4c0   :  { %1355 = vst.msk [vmem:[%s2382_s2 + $0xf8] sm:$0xff] %vm396_vm0, %v1323_v2 }
 0x4c1   :  { %1360 = vsyncpa [#allocation3], 1 }

</bundles_post_ra>
